<compile_context>
chip_gen: v7x
topology: tpu7x:2x2x1
jax: 0.10.0
libtpu: 0.0.40
codegen_flags: <defaults>
</compile_context>

<pallas_src>
import functools
import math

import jax
import jax.numpy as jnp
from jax import lax
from jax.experimental import pallas as pl
from jax.experimental.pallas import tpu as pltpu


# Row indices inside the per-layer (11, E) vector slab.
_BQ, _BK, _BV, _BO, _B2, _LN1G, _LN1B, _LN2G, _LN2B, _BNS, _BNB = range(11)


def fused_forward_kernel(ids_ref,                     # (1, S, 1) int32
                         emb_ref, pos_ref,            # (V, E), (S, E)
                         wq_ref, wk_ref, wv_ref, wo_ref,   # (NL, E, E) each
                         w1_ref, w2_ref,              # (NL, E, F), (NL, F, E)
                         vece_ref, vecf_ref,          # (NL, 11, E), (NL, 1, F)
                         wc_ref, bc_ref,              # (E, L), (1, L)
                         o_ref,                       # (1, 1, L)
                         *, num_heads):
    S, _ = pos_ref.shape
    V, E = emb_ref.shape
    NL = wq_ref.shape[0]
    H = num_heads
    Dh = E // H
    scale = 1.0 / math.sqrt(Dh)
    eps = 1e-5

    # ---- token embedding gather (one-hot matmul on the MXU) + position embedding
    ids = ids_ref[0]                                            # (S, 1) int32
    iota = lax.broadcasted_iota(jnp.int32, (S, V), 1)
    onehot = (ids == iota).astype(jnp.float32)                  # (S, V)
    x = jnp.dot(onehot, emb_ref[...].astype(jnp.float32),
                preferred_element_type=jnp.float32)
    x = x + pos_ref[...].astype(jnp.float32)                    # (S, E)

    def layer_norm(h, g, b):
        mu = jnp.mean(h, axis=-1, keepdims=True)
        var = jnp.mean((h - mu) * (h - mu), axis=-1, keepdims=True)
        return (h - mu) * lax.rsqrt(var + eps) * g + b

    # ---- static loop over stacked encoder layers (everything stays in VMEM/vregs)
    for l in range(NL):
        vec = vece_ref[l]                                       # (11, E)

        def row(i):
            return vec[i:i + 1, :]                              # (1, E)

        # dense projections (heads folded along the output dim)
        q = jnp.dot(x, wq_ref[l], preferred_element_type=jnp.float32) + row(_BQ)
        k = jnp.dot(x, wk_ref[l], preferred_element_type=jnp.float32) + row(_BK)
        v = jnp.dot(x, wv_ref[l], preferred_element_type=jnp.float32) + row(_BV)

        # split heads -> (H, S, Dh); batched einsums over the head axis
        qh = jnp.stack([q[:, h * Dh:(h + 1) * Dh] for h in range(H)], axis=0)
        kh = jnp.stack([k[:, h * Dh:(h + 1) * Dh] for h in range(H)], axis=0)
        vh = jnp.stack([v[:, h * Dh:(h + 1) * Dh] for h in range(H)], axis=0)

        s = jnp.einsum('hsd,htd->hst', qh, kh,
                       preferred_element_type=jnp.float32) * scale        # (H,S,S)
        s = s - jnp.max(s, axis=-1, keepdims=True)
        p = jnp.exp(s)
        p = p * pl.reciprocal(jnp.sum(p, axis=-1, keepdims=True), approx=True)
        ah = jnp.einsum('hst,htd->hsd', p, vh,
                        preferred_element_type=jnp.float32)               # (H,S,Dh)
        attn = jnp.concatenate([ah[h] for h in range(H)], axis=-1)        # (S, E)
        attn = jnp.dot(attn, wo_ref[l],
                       preferred_element_type=jnp.float32) + row(_BO)

        # residual + LayerNorm1
        h1 = layer_norm(x + attn, row(_LN1G), row(_LN1B))

        # feed-forward (relu)
        f = jnp.dot(h1, w1_ref[l], preferred_element_type=jnp.float32) + vecf_ref[l]
        f = jnp.maximum(f, 0.0)
        f = jnp.dot(f, w2_ref[l], preferred_element_type=jnp.float32) + row(_B2)

        # residual + LayerNorm2
        h2 = layer_norm(h1 + f, row(_LN2G), row(_LN2B))

        # eval-mode BatchNorm1d over embed channels, pre-folded into scale/bias
        x = h2 * row(_BNS) + row(_BNB)

    # ---- mean pool over sequence (mask is None) + classifier head
    pooled = jnp.sum(x, axis=0, keepdims=True) * (1.0 / S)                # (1, E)
    logits = jnp.dot(pooled, wc_ref[...],
                     preferred_element_type=jnp.float32) + bc_ref[...]    # (1, L)
    o_ref[0] = logits.astype(o_ref.dtype)


def forward(input_ids, params):
    B, S = input_ids.shape
    L = params["wc"].shape[1]
    ids3 = input_ids.reshape(B, S, 1).astype(jnp.int32)
    pos = params["pos_emb"][:S]                                 # (S, E)

    weights = [params["tok_emb"], pos,
               params["wq"], params["wk"], params["wv"], params["wo"],
               params["w1"], params["w2"],
               params["vec_e"], params["vec_f"],
               params["wc"], params["bc"]]

    def rep_spec(a):
        nd = a.ndim
        return pl.BlockSpec(a.shape, lambda b, _nd=nd: (0,) * _nd)

    in_specs = [pl.BlockSpec((1, S, 1), lambda b: (b, 0, 0))]
    in_specs += [rep_spec(w) for w in weights]

    kernel = functools.partial(fused_forward_kernel, num_heads=params["num_heads"])

    out = pl.pallas_call(
        kernel,
        out_shape=jax.ShapeDtypeStruct((B, 1, L), jnp.float32),
        grid=(B,),
        in_specs=in_specs,
        out_specs=pl.BlockSpec((1, 1, L), lambda b: (b, 0, 0)),
        compiler_params=pltpu.CompilerParams(dimension_semantics=("parallel",)),
    )(ids3, *weights)
    return out[:, 0, :]                                         # (B, L)


# ----------------------------------------------------------------------------
# Deterministic in-script parameters (stacked along a leading layer axis)
# ----------------------------------------------------------------------------
def init_params(key, vocab_size, max_seq, E, F, H, L, num_layers):
    keys = jax.random.split(key, 4 + num_layers)

    def nrm(k, shape, s):
        return (jax.random.normal(k, shape) * s).astype(jnp.float32)

    params = {
        "tok_emb": nrm(keys[0], (vocab_size, E), 0.02),
        "pos_emb": nrm(keys[1], (max_seq, E), 0.02),
        "wc": nrm(keys[2], (E, L), 0.05),
        "bc": nrm(keys[3], (1, L), 0.02),
        "num_heads": H,
    }

    wq, wk, wv, wo, w1, w2, vece, vecf = ([] for _ in range(8))
    for i in range(num_layers):
        lk = jax.random.split(keys[4 + i], 20)
        wq.append(nrm(lk[0], (E, E), 0.05))
        wk.append(nrm(lk[1], (E, E), 0.05))
        wv.append(nrm(lk[2], (E, E), 0.05))
        wo.append(nrm(lk[6], (E, E), 0.05))
        w1.append(nrm(lk[10], (E, F), 0.05))
        w2.append(nrm(lk[12], (F, E), 0.05))

        bq = nrm(lk[3], (E,), 0.02)
        bk = nrm(lk[4], (E,), 0.02)
        bv = nrm(lk[5], (E,), 0.02)
        bo = nrm(lk[7], (E,), 0.02)
        b1 = nrm(lk[11], (F,), 0.02)
        b2 = nrm(lk[13], (E,), 0.02)
        ln1_g = 1.0 + nrm(lk[8], (E,), 0.05)
        ln1_b = nrm(lk[9], (E,), 0.02)
        ln2_g = 1.0 + nrm(lk[14], (E,), 0.05)
        ln2_b = nrm(lk[15], (E,), 0.02)

        # eval-mode BatchNorm1d folded into scale/bias
        bn_gamma = 1.0 + nrm(lk[16], (E,), 0.05)
        bn_beta = nrm(lk[17], (E,), 0.02)
        bn_mean = nrm(lk[18], (E,), 0.02)
        bn_var = 1.0 + jnp.abs(nrm(lk[19], (E,), 0.05))
        bn_s = bn_gamma / jnp.sqrt(bn_var + 1e-5)
        bn_b = bn_beta - bn_mean * bn_s

        vece.append(jnp.stack(
            [bq, bk, bv, bo, b2, ln1_g, ln1_b, ln2_g, ln2_b, bn_s, bn_b], axis=0))
        vecf.append(b1.reshape(1, F))

    params.update(
        wq=jnp.stack(wq), wk=jnp.stack(wk), wv=jnp.stack(wv), wo=jnp.stack(wo),
        w1=jnp.stack(w1), w2=jnp.stack(w2),
        vec_e=jnp.stack(vece), vec_f=jnp.stack(vecf),
    )
    return params


if __name__ == "__main__":
    VOCAB, MAX_SEQ = 100, 16
    EMBED, FF, HEADS, NUM_LABELS, NUM_LAYERS = 32, 64, 4, 2, 3
    BATCH, SEQ = 2, 8

    key = jax.random.PRNGKey(0)
    pkey, dkey = jax.random.split(key)
    params = init_params(pkey, VOCAB, MAX_SEQ, EMBED, FF, HEADS, NUM_LABELS, NUM_LAYERS)
    input_ids = jax.random.randint(dkey, (BATCH, SEQ), 0, VOCAB, dtype=jnp.int32)

    logits = forward(input_ids, params)
    jax.block_until_ready(logits)
    assert logits.shape == (BATCH, NUM_LABELS)
    print("KERNEL_OK")
</pallas_src>

<mosaic_0001>
module attributes {stable_mosaic.version = 11 : i64} {
  func.func @fused_forward_kernel(%arg0: i32, %arg1: memref<1x8x1xi32, #tpu.memory_space<vmem>>, %arg2: memref<100x32xf32, #tpu.memory_space<vmem>>, %arg3: memref<8x32xf32, #tpu.memory_space<vmem>>, %arg4: memref<3x32x32xf32, #tpu.memory_space<vmem>>, %arg5: memref<3x32x32xf32, #tpu.memory_space<vmem>>, %arg6: memref<3x32x32xf32, #tpu.memory_space<vmem>>, %arg7: memref<3x32x32xf32, #tpu.memory_space<vmem>>, %arg8: memref<3x32x64xf32, #tpu.memory_space<vmem>>, %arg9: memref<3x64x32xf32, #tpu.memory_space<vmem>>, %arg10: memref<3x11x32xf32, #tpu.memory_space<vmem>>, %arg11: memref<3x1x64xf32, #tpu.memory_space<vmem>>, %arg12: memref<32x2xf32, #tpu.memory_space<vmem>>, %arg13: memref<1x2xf32, #tpu.memory_space<vmem>>, %arg14: memref<1x1x2xf32, #tpu.memory_space<vmem>>) attributes {dimension_semantics = [#tpu.dimension_semantics<parallel>], iteration_bounds = array<i64: 2>, scalar_prefetch = 0 : i64, scratch_operands = 0 : i64, tpu.core_type = #tpu.core_type<tc>, window_params = [{transform_indices = @transform_0, window_bounds = array<i64: 1, 8, 1>}, {pipeline_mode = #tpu.pipeline_mode<synchronous>, transform_indices = @transform_1, window_bounds = array<i64: 100, 32>}, {pipeline_mode = #tpu.pipeline_mode<synchronous>, transform_indices = @transform_2, window_bounds = array<i64: 8, 32>}, {pipeline_mode = #tpu.pipeline_mode<synchronous>, transform_indices = @transform_3, window_bounds = array<i64: 3, 32, 32>}, {pipeline_mode = #tpu.pipeline_mode<synchronous>, transform_indices = @transform_4, window_bounds = array<i64: 3, 32, 32>}, {pipeline_mode = #tpu.pipeline_mode<synchronous>, transform_indices = @transform_5, window_bounds = array<i64: 3, 32, 32>}, {pipeline_mode = #tpu.pipeline_mode<synchronous>, transform_indices = @transform_6, window_bounds = array<i64: 3, 32, 32>}, {pipeline_mode = #tpu.pipeline_mode<synchronous>, transform_indices = @transform_7, window_bounds = array<i64: 3, 32, 64>}, {pipeline_mode = #tpu.pipeline_mode<synchronous>, transform_indices = @transform_8, window_bounds = array<i64: 3, 64, 32>}, {pipeline_mode = #tpu.pipeline_mode<synchronous>, transform_indices = @transform_9, window_bounds = array<i64: 3, 11, 32>}, {pipeline_mode = #tpu.pipeline_mode<synchronous>, transform_indices = @transform_10, window_bounds = array<i64: 3, 1, 64>}, {pipeline_mode = #tpu.pipeline_mode<synchronous>, transform_indices = @transform_11, window_bounds = array<i64: 32, 2>}, {pipeline_mode = #tpu.pipeline_mode<synchronous>, transform_indices = @transform_12, window_bounds = array<i64: 1, 2>}, {transform_indices = @transform_13, window_bounds = array<i64: 1, 1, 2>}]} {
    %c0 = arith.constant 0 : index
    %c0_0 = arith.constant 0 : index
    %c0_1 = arith.constant 0 : index
    %0 = vector.load %arg1[%c0, %c0_0, %c0_1] : memref<1x8x1xi32, #tpu.memory_space<vmem>>, vector<1x8x1xi32>
    %1 = vector.shape_cast %0 : vector<1x8x1xi32> to vector<8x1xi32>
    %2 = tpu.iota {dimensions = array<i32: 1>} : vector<8x100xi32>
    %3 = vector.broadcast %1 : vector<8x1xi32> to vector<8x100xi32>
    %4 = arith.cmpi eq, %3, %2 : vector<8x100xi32>
    %5 = arith.extui %4 : vector<8x100xi1> to vector<8x100xi32>
    %6 = arith.sitofp %5 : vector<8x100xi32> to vector<8x100xf32>
    %c0_2 = arith.constant 0 : index
    %c0_3 = arith.constant 0 : index
    %7 = vector.load %arg2[%c0_2, %c0_3] : memref<100x32xf32, #tpu.memory_space<vmem>>, vector<100x32xf32>
    %cst = arith.constant dense<0.000000e+00> : vector<8x32xf32>
    %8 = tpu.matmul %6, %7, %cst {dimension_numbers = #tpu.dot_dimension_numbers<[1], [0], [0], [1], [0, 0, 1, 1], [], []>} : vector<8x100xf32>, vector<100x32xf32>, vector<8x32xf32> -> vector<8x32xf32>
    %c0_4 = arith.constant 0 : index
    %c0_5 = arith.constant 0 : index
    %9 = vector.load %arg3[%c0_4, %c0_5] : memref<8x32xf32, #tpu.memory_space<vmem>>, vector<8x32xf32>
    %10 = arith.addf %8, %9 : vector<8x32xf32>
    %c0_6 = arith.constant 0 : index
    %c0_7 = arith.constant 0 : index
    %c0_8 = arith.constant 0 : index
    %11 = vector.load %arg10[%c0_6, %c0_7, %c0_8] : memref<3x11x32xf32, #tpu.memory_space<vmem>>, vector<1x11x32xf32>
    %12 = vector.shape_cast %11 : vector<1x11x32xf32> to vector<11x32xf32>
    %c0_9 = arith.constant 0 : index
    %c0_10 = arith.constant 0 : index
    %c0_11 = arith.constant 0 : index
    %13 = vector.load %arg4[%c0_9, %c0_10, %c0_11] : memref<3x32x32xf32, #tpu.memory_space<vmem>>, vector<1x32x32xf32>
    %14 = vector.shape_cast %13 : vector<1x32x32xf32> to vector<32x32xf32>
    %cst_12 = arith.constant dense<0.000000e+00> : vector<8x32xf32>
    %15 = tpu.matmul %10, %14, %cst_12 {dimension_numbers = #tpu.dot_dimension_numbers<[1], [0], [0], [1], [0, 0, 1, 1], [], []>} : vector<8x32xf32>, vector<32x32xf32>, vector<8x32xf32> -> vector<8x32xf32>
    %16 = vector.extract_strided_slice %12 {offsets = [0, 0], sizes = [1, 32], strides = [1, 1]} : vector<11x32xf32> to vector<1x32xf32>
    %17 = vector.broadcast %16 : vector<1x32xf32> to vector<8x32xf32>
    %18 = arith.addf %15, %17 : vector<8x32xf32>
    %c0_13 = arith.constant 0 : index
    %c0_14 = arith.constant 0 : index
    %c0_15 = arith.constant 0 : index
    %19 = vector.load %arg5[%c0_13, %c0_14, %c0_15] : memref<3x32x32xf32, #tpu.memory_space<vmem>>, vector<1x32x32xf32>
    %20 = vector.shape_cast %19 : vector<1x32x32xf32> to vector<32x32xf32>
    %cst_16 = arith.constant dense<0.000000e+00> : vector<8x32xf32>
    %21 = tpu.matmul %10, %20, %cst_16 {dimension_numbers = #tpu.dot_dimension_numbers<[1], [0], [0], [1], [0, 0, 1, 1], [], []>} : vector<8x32xf32>, vector<32x32xf32>, vector<8x32xf32> -> vector<8x32xf32>
    %22 = vector.extract_strided_slice %12 {offsets = [1, 0], sizes = [1, 32], strides = [1, 1]} : vector<11x32xf32> to vector<1x32xf32>
    %23 = vector.broadcast %22 : vector<1x32xf32> to vector<8x32xf32>
    %24 = arith.addf %21, %23 : vector<8x32xf32>
    %c0_17 = arith.constant 0 : index
    %c0_18 = arith.constant 0 : index
    %c0_19 = arith.constant 0 : index
    %25 = vector.load %arg6[%c0_17, %c0_18, %c0_19] : memref<3x32x32xf32, #tpu.memory_space<vmem>>, vector<1x32x32xf32>
    %26 = vector.shape_cast %25 : vector<1x32x32xf32> to vector<32x32xf32>
    %cst_20 = arith.constant dense<0.000000e+00> : vector<8x32xf32>
    %27 = tpu.matmul %10, %26, %cst_20 {dimension_numbers = #tpu.dot_dimension_numbers<[1], [0], [0], [1], [0, 0, 1, 1], [], []>} : vector<8x32xf32>, vector<32x32xf32>, vector<8x32xf32> -> vector<8x32xf32>
    %28 = vector.extract_strided_slice %12 {offsets = [2, 0], sizes = [1, 32], strides = [1, 1]} : vector<11x32xf32> to vector<1x32xf32>
    %29 = vector.broadcast %28 : vector<1x32xf32> to vector<8x32xf32>
    %30 = arith.addf %27, %29 : vector<8x32xf32>
    %31 = vector.extract_strided_slice %18 {offsets = [0, 0], sizes = [8, 8], strides = [1, 1]} : vector<8x32xf32> to vector<8x8xf32>
    %32 = vector.extract_strided_slice %18 {offsets = [0, 8], sizes = [8, 8], strides = [1, 1]} : vector<8x32xf32> to vector<8x8xf32>
    %33 = vector.extract_strided_slice %18 {offsets = [0, 16], sizes = [8, 8], strides = [1, 1]} : vector<8x32xf32> to vector<8x8xf32>
    %34 = vector.extract_strided_slice %18 {offsets = [0, 24], sizes = [8, 8], strides = [1, 1]} : vector<8x32xf32> to vector<8x8xf32>
    %35 = vector.shape_cast %31 : vector<8x8xf32> to vector<1x8x8xf32>
    %36 = vector.shape_cast %32 : vector<8x8xf32> to vector<1x8x8xf32>
    %37 = vector.shape_cast %33 : vector<8x8xf32> to vector<1x8x8xf32>
    %38 = vector.shape_cast %34 : vector<8x8xf32> to vector<1x8x8xf32>
    %39 = tpu.concatenate %35, %36, %37, %38 in 0 : vector<1x8x8xf32>, vector<1x8x8xf32>, vector<1x8x8xf32>, vector<1x8x8xf32> -> vector<4x8x8xf32>
    %40 = vector.extract_strided_slice %24 {offsets = [0, 0], sizes = [8, 8], strides = [1, 1]} : vector<8x32xf32> to vector<8x8xf32>
    %41 = vector.extract_strided_slice %24 {offsets = [0, 8], sizes = [8, 8], strides = [1, 1]} : vector<8x32xf32> to vector<8x8xf32>
    %42 = vector.extract_strided_slice %24 {offsets = [0, 16], sizes = [8, 8], strides = [1, 1]} : vector<8x32xf32> to vector<8x8xf32>
    %43 = vector.extract_strided_slice %24 {offsets = [0, 24], sizes = [8, 8], strides = [1, 1]} : vector<8x32xf32> to vector<8x8xf32>
    %44 = vector.shape_cast %40 : vector<8x8xf32> to vector<1x8x8xf32>
    %45 = vector.shape_cast %41 : vector<8x8xf32> to vector<1x8x8xf32>
    %46 = vector.shape_cast %42 : vector<8x8xf32> to vector<1x8x8xf32>
    %47 = vector.shape_cast %43 : vector<8x8xf32> to vector<1x8x8xf32>
    %48 = tpu.concatenate %44, %45, %46, %47 in 0 : vector<1x8x8xf32>, vector<1x8x8xf32>, vector<1x8x8xf32>, vector<1x8x8xf32> -> vector<4x8x8xf32>
    %49 = vector.extract_strided_slice %30 {offsets = [0, 0], sizes = [8, 8], strides = [1, 1]} : vector<8x32xf32> to vector<8x8xf32>
    %50 = vector.extract_strided_slice %30 {offsets = [0, 8], sizes = [8, 8], strides = [1, 1]} : vector<8x32xf32> to vector<8x8xf32>
    %51 = vector.extract_strided_slice %30 {offsets = [0, 16], sizes = [8, 8], strides = [1, 1]} : vector<8x32xf32> to vector<8x8xf32>
    %52 = vector.extract_strided_slice %30 {offsets = [0, 24], sizes = [8, 8], strides = [1, 1]} : vector<8x32xf32> to vector<8x8xf32>
    %53 = vector.shape_cast %49 : vector<8x8xf32> to vector<1x8x8xf32>
    %54 = vector.shape_cast %50 : vector<8x8xf32> to vector<1x8x8xf32>
    %55 = vector.shape_cast %51 : vector<8x8xf32> to vector<1x8x8xf32>
    %56 = vector.shape_cast %52 : vector<8x8xf32> to vector<1x8x8xf32>
    %57 = tpu.concatenate %53, %54, %55, %56 in 0 : vector<1x8x8xf32>, vector<1x8x8xf32>, vector<1x8x8xf32>, vector<1x8x8xf32> -> vector<4x8x8xf32>
    "tpu.trace_start"() <{level = 10 : i32, message = "hsd,htd->hst"}> : () -> ()
    %cst_21 = arith.constant dense<0.000000e+00> : vector<4x8x8xf32>
    %58 = tpu.matmul %39, %48, %cst_21 {dimension_numbers = #tpu.dot_dimension_numbers<[2], [2], [1], [1], [0, 0, 0, 1, 1, 1], [0], [0]>} : vector<4x8x8xf32>, vector<4x8x8xf32>, vector<4x8x8xf32> -> vector<4x8x8xf32>
    "tpu.trace_stop"() : () -> ()
    %cst_22 = arith.constant 0.353553385 : f32
    %59 = vector.broadcast %cst_22 : f32 to vector<4x8x8xf32>
    %60 = arith.mulf %58, %59 : vector<4x8x8xf32>
    %cst_23 = arith.constant dense<0xFF800000> : vector<4x8xf32>
    %61 = vector.multi_reduction <maximumf>, %60, %cst_23 [2] : vector<4x8x8xf32> to vector<4x8xf32>
    %62 = vector.shape_cast %61 : vector<4x8xf32> to vector<4x8x1xf32>
    %63 = vector.broadcast %62 : vector<4x8x1xf32> to vector<4x8x8xf32>
    %64 = arith.subf %60, %63 : vector<4x8x8xf32>
    %65 = math.exp %64 : vector<4x8x8xf32>
    %cst_24 = arith.constant dense<0.000000e+00> : vector<4x8xf32>
    %66 = vector.multi_reduction <add>, %65, %cst_24 [2] : vector<4x8x8xf32> to vector<4x8xf32>
    %67 = vector.shape_cast %66 : vector<4x8xf32> to vector<4x8x1xf32>
    %68 = tpu.reciprocal %67 {approx = true} : vector<4x8x1xf32> -> vector<4x8x1xf32>
    %69 = vector.broadcast %68 : vector<4x8x1xf32> to vector<4x8x8xf32>
    %70 = arith.mulf %65, %69 : vector<4x8x8xf32>
    "tpu.trace_start"() <{level = 10 : i32, message = "hst,htd->hsd"}> : () -> ()
    %cst_25 = arith.constant dense<0.000000e+00> : vector<4x8x8xf32>
    %71 = tpu.matmul %70, %57, %cst_25 {dimension_numbers = #tpu.dot_dimension_numbers<[2], [1], [1], [2], [0, 0, 0, 1, 1, 2], [0], [0]>} : vector<4x8x8xf32>, vector<4x8x8xf32>, vector<4x8x8xf32> -> vector<4x8x8xf32>
    "tpu.trace_stop"() : () -> ()
    %72 = vector.extract_strided_slice %71 {offsets = [0, 0, 0], sizes = [1, 8, 8], strides = [1, 1, 1]} : vector<4x8x8xf32> to vector<1x8x8xf32>
    %73 = vector.shape_cast %72 : vector<1x8x8xf32> to vector<8x8xf32>
    %74 = vector.extract_strided_slice %71 {offsets = [1, 0, 0], sizes = [1, 8, 8], strides = [1, 1, 1]} : vector<4x8x8xf32> to vector<1x8x8xf32>
    %75 = vector.shape_cast %74 : vector<1x8x8xf32> to vector<8x8xf32>
    %76 = vector.extract_strided_slice %71 {offsets = [2, 0, 0], sizes = [1, 8, 8], strides = [1, 1, 1]} : vector<4x8x8xf32> to vector<1x8x8xf32>
    %77 = vector.shape_cast %76 : vector<1x8x8xf32> to vector<8x8xf32>
    %78 = vector.extract_strided_slice %71 {offsets = [3, 0, 0], sizes = [1, 8, 8], strides = [1, 1, 1]} : vector<4x8x8xf32> to vector<1x8x8xf32>
    %79 = vector.shape_cast %78 : vector<1x8x8xf32> to vector<8x8xf32>
    %80 = tpu.concatenate %73, %75, %77, %79 in 1 : vector<8x8xf32>, vector<8x8xf32>, vector<8x8xf32>, vector<8x8xf32> -> vector<8x32xf32>
    %c0_26 = arith.constant 0 : index
    %c0_27 = arith.constant 0 : index
    %c0_28 = arith.constant 0 : index
    %81 = vector.load %arg7[%c0_26, %c0_27, %c0_28] : memref<3x32x32xf32, #tpu.memory_space<vmem>>, vector<1x32x32xf32>
    %82 = vector.shape_cast %81 : vector<1x32x32xf32> to vector<32x32xf32>
    %cst_29 = arith.constant dense<0.000000e+00> : vector<8x32xf32>
    %83 = tpu.matmul %80, %82, %cst_29 {dimension_numbers = #tpu.dot_dimension_numbers<[1], [0], [0], [1], [0, 0, 1, 1], [], []>} : vector<8x32xf32>, vector<32x32xf32>, vector<8x32xf32> -> vector<8x32xf32>
    %84 = vector.extract_strided_slice %12 {offsets = [3, 0], sizes = [1, 32], strides = [1, 1]} : vector<11x32xf32> to vector<1x32xf32>
    %85 = vector.broadcast %84 : vector<1x32xf32> to vector<8x32xf32>
    %86 = arith.addf %83, %85 : vector<8x32xf32>
    %87 = arith.addf %10, %86 : vector<8x32xf32>
    %88 = vector.extract_strided_slice %12 {offsets = [5, 0], sizes = [1, 32], strides = [1, 1]} : vector<11x32xf32> to vector<1x32xf32>
    %89 = vector.extract_strided_slice %12 {offsets = [6, 0], sizes = [1, 32], strides = [1, 1]} : vector<11x32xf32> to vector<1x32xf32>
    %cst_30 = arith.constant dense<0.000000e+00> : vector<8xf32>
    %90 = vector.multi_reduction <add>, %87, %cst_30 [1] : vector<8x32xf32> to vector<8xf32>
    %91 = vector.shape_cast %90 : vector<8xf32> to vector<8x1xf32>
    %cst_31 = arith.constant 3.200000e+01 : f32
    %92 = vector.broadcast %cst_31 : f32 to vector<8x1xf32>
    %93 = arith.divf %91, %92 : vector<8x1xf32>
    %94 = vector.broadcast %93 : vector<8x1xf32> to vector<8x32xf32>
    %95 = arith.subf %87, %94 : vector<8x32xf32>
    %96 = vector.broadcast %93 : vector<8x1xf32> to vector<8x32xf32>
    %97 = arith.subf %87, %96 : vector<8x32xf32>
    %98 = arith.mulf %95, %97 : vector<8x32xf32>
    %cst_32 = arith.constant dense<0.000000e+00> : vector<8xf32>
    %99 = vector.multi_reduction <add>, %98, %cst_32 [1] : vector<8x32xf32> to vector<8xf32>
    %100 = vector.shape_cast %99 : vector<8xf32> to vector<8x1xf32>
    %cst_33 = arith.constant 3.200000e+01 : f32
    %101 = vector.broadcast %cst_33 : f32 to vector<8x1xf32>
    %102 = arith.divf %100, %101 : vector<8x1xf32>
    %103 = vector.broadcast %93 : vector<8x1xf32> to vector<8x32xf32>
    %104 = arith.subf %87, %103 : vector<8x32xf32>
    %cst_34 = arith.constant 9.99999974E-6 : f32
    %105 = vector.broadcast %cst_34 : f32 to vector<8x1xf32>
    %106 = arith.addf %102, %105 : vector<8x1xf32>
    %107 = math.rsqrt %106 : vector<8x1xf32>
    %108 = vector.broadcast %107 : vector<8x1xf32> to vector<8x32xf32>
    %109 = arith.mulf %104, %108 : vector<8x32xf32>
    %110 = vector.broadcast %88 : vector<1x32xf32> to vector<8x32xf32>
    %111 = arith.mulf %109, %110 : vector<8x32xf32>
    %112 = vector.broadcast %89 : vector<1x32xf32> to vector<8x32xf32>
    %113 = arith.addf %111, %112 : vector<8x32xf32>
    %c0_35 = arith.constant 0 : index
    %c0_36 = arith.constant 0 : index
    %c0_37 = arith.constant 0 : index
    %114 = vector.load %arg8[%c0_35, %c0_36, %c0_37] : memref<3x32x64xf32, #tpu.memory_space<vmem>>, vector<1x32x64xf32>
    %115 = vector.shape_cast %114 : vector<1x32x64xf32> to vector<32x64xf32>
    %cst_38 = arith.constant dense<0.000000e+00> : vector<8x64xf32>
    %116 = tpu.matmul %113, %115, %cst_38 {dimension_numbers = #tpu.dot_dimension_numbers<[1], [0], [0], [1], [0, 0, 1, 1], [], []>} : vector<8x32xf32>, vector<32x64xf32>, vector<8x64xf32> -> vector<8x64xf32>
    %c0_39 = arith.constant 0 : index
    %c0_40 = arith.constant 0 : index
    %c0_41 = arith.constant 0 : index
    %117 = vector.load %arg11[%c0_39, %c0_40, %c0_41] : memref<3x1x64xf32, #tpu.memory_space<vmem>>, vector<1x1x64xf32>
    %118 = vector.shape_cast %117 : vector<1x1x64xf32> to vector<1x64xf32>
    %119 = vector.broadcast %118 : vector<1x64xf32> to vector<8x64xf32>
    %120 = arith.addf %116, %119 : vector<8x64xf32>
    %cst_42 = arith.constant 0.000000e+00 : f32
    %121 = vector.broadcast %cst_42 : f32 to vector<8x64xf32>
    %122 = arith.maximumf %120, %121 : vector<8x64xf32>
    %c0_43 = arith.constant 0 : index
    %c0_44 = arith.constant 0 : index
    %c0_45 = arith.constant 0 : index
    %123 = vector.load %arg9[%c0_43, %c0_44, %c0_45] : memref<3x64x32xf32, #tpu.memory_space<vmem>>, vector<1x64x32xf32>
    %124 = vector.shape_cast %123 : vector<1x64x32xf32> to vector<64x32xf32>
    %cst_46 = arith.constant dense<0.000000e+00> : vector<8x32xf32>
    %125 = tpu.matmul %122, %124, %cst_46 {dimension_numbers = #tpu.dot_dimension_numbers<[1], [0], [0], [1], [0, 0, 1, 1], [], []>} : vector<8x64xf32>, vector<64x32xf32>, vector<8x32xf32> -> vector<8x32xf32>
    %126 = vector.extract_strided_slice %12 {offsets = [4, 0], sizes = [1, 32], strides = [1, 1]} : vector<11x32xf32> to vector<1x32xf32>
    %127 = vector.broadcast %126 : vector<1x32xf32> to vector<8x32xf32>
    %128 = arith.addf %125, %127 : vector<8x32xf32>
    %129 = arith.addf %113, %128 : vector<8x32xf32>
    %130 = vector.extract_strided_slice %12 {offsets = [7, 0], sizes = [1, 32], strides = [1, 1]} : vector<11x32xf32> to vector<1x32xf32>
    %131 = vector.extract_strided_slice %12 {offsets = [8, 0], sizes = [1, 32], strides = [1, 1]} : vector<11x32xf32> to vector<1x32xf32>
    %cst_47 = arith.constant dense<0.000000e+00> : vector<8xf32>
    %132 = vector.multi_reduction <add>, %129, %cst_47 [1] : vector<8x32xf32> to vector<8xf32>
    %133 = vector.shape_cast %132 : vector<8xf32> to vector<8x1xf32>
    %cst_48 = arith.constant 3.200000e+01 : f32
    %134 = vector.broadcast %cst_48 : f32 to vector<8x1xf32>
    %135 = arith.divf %133, %134 : vector<8x1xf32>
    %136 = vector.broadcast %135 : vector<8x1xf32> to vector<8x32xf32>
    %137 = arith.subf %129, %136 : vector<8x32xf32>
    %138 = vector.broadcast %135 : vector<8x1xf32> to vector<8x32xf32>
    %139 = arith.subf %129, %138 : vector<8x32xf32>
    %140 = arith.mulf %137, %139 : vector<8x32xf32>
    %cst_49 = arith.constant dense<0.000000e+00> : vector<8xf32>
    %141 = vector.multi_reduction <add>, %140, %cst_49 [1] : vector<8x32xf32> to vector<8xf32>
    %142 = vector.shape_cast %141 : vector<8xf32> to vector<8x1xf32>
    %cst_50 = arith.constant 3.200000e+01 : f32
    %143 = vector.broadcast %cst_50 : f32 to vector<8x1xf32>
    %144 = arith.divf %142, %143 : vector<8x1xf32>
    %145 = vector.broadcast %135 : vector<8x1xf32> to vector<8x32xf32>
    %146 = arith.subf %129, %145 : vector<8x32xf32>
    %cst_51 = arith.constant 9.99999974E-6 : f32
    %147 = vector.broadcast %cst_51 : f32 to vector<8x1xf32>
    %148 = arith.addf %144, %147 : vector<8x1xf32>
    %149 = math.rsqrt %148 : vector<8x1xf32>
    %150 = vector.broadcast %149 : vector<8x1xf32> to vector<8x32xf32>
    %151 = arith.mulf %146, %150 : vector<8x32xf32>
    %152 = vector.broadcast %130 : vector<1x32xf32> to vector<8x32xf32>
    %153 = arith.mulf %151, %152 : vector<8x32xf32>
    %154 = vector.broadcast %131 : vector<1x32xf32> to vector<8x32xf32>
    %155 = arith.addf %153, %154 : vector<8x32xf32>
    %156 = vector.extract_strided_slice %12 {offsets = [9, 0], sizes = [1, 32], strides = [1, 1]} : vector<11x32xf32> to vector<1x32xf32>
    %157 = vector.broadcast %156 : vector<1x32xf32> to vector<8x32xf32>
    %158 = arith.mulf %155, %157 : vector<8x32xf32>
    %159 = vector.extract_strided_slice %12 {offsets = [10, 0], sizes = [1, 32], strides = [1, 1]} : vector<11x32xf32> to vector<1x32xf32>
    %160 = vector.broadcast %159 : vector<1x32xf32> to vector<8x32xf32>
    %161 = arith.addf %158, %160 : vector<8x32xf32>
    %c1 = arith.constant 1 : index
    %c0_52 = arith.constant 0 : index
    %c0_53 = arith.constant 0 : index
    %162 = vector.load %arg10[%c1, %c0_52, %c0_53] : memref<3x11x32xf32, #tpu.memory_space<vmem>>, vector<1x11x32xf32>
    %163 = vector.shape_cast %162 : vector<1x11x32xf32> to vector<11x32xf32>
    %c1_54 = arith.constant 1 : index
    %c0_55 = arith.constant 0 : index
    %c0_56 = arith.constant 0 : index
    %164 = vector.load %arg4[%c1_54, %c0_55, %c0_56] : memref<3x32x32xf32, #tpu.memory_space<vmem>>, vector<1x32x32xf32>
    %165 = vector.shape_cast %164 : vector<1x32x32xf32> to vector<32x32xf32>
    %cst_57 = arith.constant dense<0.000000e+00> : vector<8x32xf32>
    %166 = tpu.matmul %161, %165, %cst_57 {dimension_numbers = #tpu.dot_dimension_numbers<[1], [0], [0], [1], [0, 0, 1, 1], [], []>} : vector<8x32xf32>, vector<32x32xf32>, vector<8x32xf32> -> vector<8x32xf32>
    %167 = vector.extract_strided_slice %163 {offsets = [0, 0], sizes = [1, 32], strides = [1, 1]} : vector<11x32xf32> to vector<1x32xf32>
    %168 = vector.broadcast %167 : vector<1x32xf32> to vector<8x32xf32>
    %169 = arith.addf %166, %168 : vector<8x32xf32>
    %c1_58 = arith.constant 1 : index
    %c0_59 = arith.constant 0 : index
    %c0_60 = arith.constant 0 : index
    %170 = vector.load %arg5[%c1_58, %c0_59, %c0_60] : memref<3x32x32xf32, #tpu.memory_space<vmem>>, vector<1x32x32xf32>
    %171 = vector.shape_cast %170 : vector<1x32x32xf32> to vector<32x32xf32>
    %cst_61 = arith.constant dense<0.000000e+00> : vector<8x32xf32>
    %172 = tpu.matmul %161, %171, %cst_61 {dimension_numbers = #tpu.dot_dimension_numbers<[1], [0], [0], [1], [0, 0, 1, 1], [], []>} : vector<8x32xf32>, vector<32x32xf32>, vector<8x32xf32> -> vector<8x32xf32>
    %173 = vector.extract_strided_slice %163 {offsets = [1, 0], sizes = [1, 32], strides = [1, 1]} : vector<11x32xf32> to vector<1x32xf32>
    %174 = vector.broadcast %173 : vector<1x32xf32> to vector<8x32xf32>
    %175 = arith.addf %172, %174 : vector<8x32xf32>
    %c1_62 = arith.constant 1 : index
    %c0_63 = arith.constant 0 : index
    %c0_64 = arith.constant 0 : index
    %176 = vector.load %arg6[%c1_62, %c0_63, %c0_64] : memref<3x32x32xf32, #tpu.memory_space<vmem>>, vector<1x32x32xf32>
    %177 = vector.shape_cast %176 : vector<1x32x32xf32> to vector<32x32xf32>
    %cst_65 = arith.constant dense<0.000000e+00> : vector<8x32xf32>
    %178 = tpu.matmul %161, %177, %cst_65 {dimension_numbers = #tpu.dot_dimension_numbers<[1], [0], [0], [1], [0, 0, 1, 1], [], []>} : vector<8x32xf32>, vector<32x32xf32>, vector<8x32xf32> -> vector<8x32xf32>
    %179 = vector.extract_strided_slice %163 {offsets = [2, 0], sizes = [1, 32], strides = [1, 1]} : vector<11x32xf32> to vector<1x32xf32>
    %180 = vector.broadcast %179 : vector<1x32xf32> to vector<8x32xf32>
    %181 = arith.addf %178, %180 : vector<8x32xf32>
    %182 = vector.extract_strided_slice %169 {offsets = [0, 0], sizes = [8, 8], strides = [1, 1]} : vector<8x32xf32> to vector<8x8xf32>
    %183 = vector.extract_strided_slice %169 {offsets = [0, 8], sizes = [8, 8], strides = [1, 1]} : vector<8x32xf32> to vector<8x8xf32>
    %184 = vector.extract_strided_slice %169 {offsets = [0, 16], sizes = [8, 8], strides = [1, 1]} : vector<8x32xf32> to vector<8x8xf32>
    %185 = vector.extract_strided_slice %169 {offsets = [0, 24], sizes = [8, 8], strides = [1, 1]} : vector<8x32xf32> to vector<8x8xf32>
    %186 = vector.shape_cast %182 : vector<8x8xf32> to vector<1x8x8xf32>
    %187 = vector.shape_cast %183 : vector<8x8xf32> to vector<1x8x8xf32>
    %188 = vector.shape_cast %184 : vector<8x8xf32> to vector<1x8x8xf32>
    %189 = vector.shape_cast %185 : vector<8x8xf32> to vector<1x8x8xf32>
    %190 = tpu.concatenate %186, %187, %188, %189 in 0 : vector<1x8x8xf32>, vector<1x8x8xf32>, vector<1x8x8xf32>, vector<1x8x8xf32> -> vector<4x8x8xf32>
    %191 = vector.extract_strided_slice %175 {offsets = [0, 0], sizes = [8, 8], strides = [1, 1]} : vector<8x32xf32> to vector<8x8xf32>
    %192 = vector.extract_strided_slice %175 {offsets = [0, 8], sizes = [8, 8], strides = [1, 1]} : vector<8x32xf32> to vector<8x8xf32>
    %193 = vector.extract_strided_slice %175 {offsets = [0, 16], sizes = [8, 8], strides = [1, 1]} : vector<8x32xf32> to vector<8x8xf32>
    %194 = vector.extract_strided_slice %175 {offsets = [0, 24], sizes = [8, 8], strides = [1, 1]} : vector<8x32xf32> to vector<8x8xf32>
    %195 = vector.shape_cast %191 : vector<8x8xf32> to vector<1x8x8xf32>
    %196 = vector.shape_cast %192 : vector<8x8xf32> to vector<1x8x8xf32>
    %197 = vector.shape_cast %193 : vector<8x8xf32> to vector<1x8x8xf32>
    %198 = vector.shape_cast %194 : vector<8x8xf32> to vector<1x8x8xf32>
    %199 = tpu.concatenate %195, %196, %197, %198 in 0 : vector<1x8x8xf32>, vector<1x8x8xf32>, vector<1x8x8xf32>, vector<1x8x8xf32> -> vector<4x8x8xf32>
    %200 = vector.extract_strided_slice %181 {offsets = [0, 0], sizes = [8, 8], strides = [1, 1]} : vector<8x32xf32> to vector<8x8xf32>
    %201 = vector.extract_strided_slice %181 {offsets = [0, 8], sizes = [8, 8], strides = [1, 1]} : vector<8x32xf32> to vector<8x8xf32>
    %202 = vector.extract_strided_slice %181 {offsets = [0, 16], sizes = [8, 8], strides = [1, 1]} : vector<8x32xf32> to vector<8x8xf32>
    %203 = vector.extract_strided_slice %181 {offsets = [0, 24], sizes = [8, 8], strides = [1, 1]} : vector<8x32xf32> to vector<8x8xf32>
    %204 = vector.shape_cast %200 : vector<8x8xf32> to vector<1x8x8xf32>
    %205 = vector.shape_cast %201 : vector<8x8xf32> to vector<1x8x8xf32>
    %206 = vector.shape_cast %202 : vector<8x8xf32> to vector<1x8x8xf32>
    %207 = vector.shape_cast %203 : vector<8x8xf32> to vector<1x8x8xf32>
    %208 = tpu.concatenate %204, %205, %206, %207 in 0 : vector<1x8x8xf32>, vector<1x8x8xf32>, vector<1x8x8xf32>, vector<1x8x8xf32> -> vector<4x8x8xf32>
    "tpu.trace_start"() <{level = 10 : i32, message = "hsd,htd->hst"}> : () -> ()
    %cst_66 = arith.constant dense<0.000000e+00> : vector<4x8x8xf32>
    %209 = tpu.matmul %190, %199, %cst_66 {dimension_numbers = #tpu.dot_dimension_numbers<[2], [2], [1], [1], [0, 0, 0, 1, 1, 1], [0], [0]>} : vector<4x8x8xf32>, vector<4x8x8xf32>, vector<4x8x8xf32> -> vector<4x8x8xf32>
    "tpu.trace_stop"() : () -> ()
    %cst_67 = arith.constant 0.353553385 : f32
    %210 = vector.broadcast %cst_67 : f32 to vector<4x8x8xf32>
    %211 = arith.mulf %209, %210 : vector<4x8x8xf32>
    %cst_68 = arith.constant dense<0xFF800000> : vector<4x8xf32>
    %212 = vector.multi_reduction <maximumf>, %211, %cst_68 [2] : vector<4x8x8xf32> to vector<4x8xf32>
    %213 = vector.shape_cast %212 : vector<4x8xf32> to vector<4x8x1xf32>
    %214 = vector.broadcast %213 : vector<4x8x1xf32> to vector<4x8x8xf32>
    %215 = arith.subf %211, %214 : vector<4x8x8xf32>
    %216 = math.exp %215 : vector<4x8x8xf32>
    %cst_69 = arith.constant dense<0.000000e+00> : vector<4x8xf32>
    %217 = vector.multi_reduction <add>, %216, %cst_69 [2] : vector<4x8x8xf32> to vector<4x8xf32>
    %218 = vector.shape_cast %217 : vector<4x8xf32> to vector<4x8x1xf32>
    %219 = tpu.reciprocal %218 {approx = true} : vector<4x8x1xf32> -> vector<4x8x1xf32>
    %220 = vector.broadcast %219 : vector<4x8x1xf32> to vector<4x8x8xf32>
    %221 = arith.mulf %216, %220 : vector<4x8x8xf32>
    "tpu.trace_start"() <{level = 10 : i32, message = "hst,htd->hsd"}> : () -> ()
    %cst_70 = arith.constant dense<0.000000e+00> : vector<4x8x8xf32>
    %222 = tpu.matmul %221, %208, %cst_70 {dimension_numbers = #tpu.dot_dimension_numbers<[2], [1], [1], [2], [0, 0, 0, 1, 1, 2], [0], [0]>} : vector<4x8x8xf32>, vector<4x8x8xf32>, vector<4x8x8xf32> -> vector<4x8x8xf32>
    "tpu.trace_stop"() : () -> ()
    %223 = vector.extract_strided_slice %222 {offsets = [0, 0, 0], sizes = [1, 8, 8], strides = [1, 1, 1]} : vector<4x8x8xf32> to vector<1x8x8xf32>
    %224 = vector.shape_cast %223 : vector<1x8x8xf32> to vector<8x8xf32>
    %225 = vector.extract_strided_slice %222 {offsets = [1, 0, 0], sizes = [1, 8, 8], strides = [1, 1, 1]} : vector<4x8x8xf32> to vector<1x8x8xf32>
    %226 = vector.shape_cast %225 : vector<1x8x8xf32> to vector<8x8xf32>
    %227 = vector.extract_strided_slice %222 {offsets = [2, 0, 0], sizes = [1, 8, 8], strides = [1, 1, 1]} : vector<4x8x8xf32> to vector<1x8x8xf32>
    %228 = vector.shape_cast %227 : vector<1x8x8xf32> to vector<8x8xf32>
    %229 = vector.extract_strided_slice %222 {offsets = [3, 0, 0], sizes = [1, 8, 8], strides = [1, 1, 1]} : vector<4x8x8xf32> to vector<1x8x8xf32>
    %230 = vector.shape_cast %229 : vector<1x8x8xf32> to vector<8x8xf32>
    %231 = tpu.concatenate %224, %226, %228, %230 in 1 : vector<8x8xf32>, vector<8x8xf32>, vector<8x8xf32>, vector<8x8xf32> -> vector<8x32xf32>
    %c1_71 = arith.constant 1 : index
    %c0_72 = arith.constant 0 : index
    %c0_73 = arith.constant 0 : index
    %232 = vector.load %arg7[%c1_71, %c0_72, %c0_73] : memref<3x32x32xf32, #tpu.memory_space<vmem>>, vector<1x32x32xf32>
    %233 = vector.shape_cast %232 : vector<1x32x32xf32> to vector<32x32xf32>
    %cst_74 = arith.constant dense<0.000000e+00> : vector<8x32xf32>
    %234 = tpu.matmul %231, %233, %cst_74 {dimension_numbers = #tpu.dot_dimension_numbers<[1], [0], [0], [1], [0, 0, 1, 1], [], []>} : vector<8x32xf32>, vector<32x32xf32>, vector<8x32xf32> -> vector<8x32xf32>
    %235 = vector.extract_strided_slice %163 {offsets = [3, 0], sizes = [1, 32], strides = [1, 1]} : vector<11x32xf32> to vector<1x32xf32>
    %236 = vector.broadcast %235 : vector<1x32xf32> to vector<8x32xf32>
    %237 = arith.addf %234, %236 : vector<8x32xf32>
    %238 = arith.addf %161, %237 : vector<8x32xf32>
    %239 = vector.extract_strided_slice %163 {offsets = [5, 0], sizes = [1, 32], strides = [1, 1]} : vector<11x32xf32> to vector<1x32xf32>
    %240 = vector.extract_strided_slice %163 {offsets = [6, 0], sizes = [1, 32], strides = [1, 1]} : vector<11x32xf32> to vector<1x32xf32>
    %cst_75 = arith.constant dense<0.000000e+00> : vector<8xf32>
    %241 = vector.multi_reduction <add>, %238, %cst_75 [1] : vector<8x32xf32> to vector<8xf32>
    %242 = vector.shape_cast %241 : vector<8xf32> to vector<8x1xf32>
    %cst_76 = arith.constant 3.200000e+01 : f32
    %243 = vector.broadcast %cst_76 : f32 to vector<8x1xf32>
    %244 = arith.divf %242, %243 : vector<8x1xf32>
    %245 = vector.broadcast %244 : vector<8x1xf32> to vector<8x32xf32>
    %246 = arith.subf %238, %245 : vector<8x32xf32>
    %247 = vector.broadcast %244 : vector<8x1xf32> to vector<8x32xf32>
    %248 = arith.subf %238, %247 : vector<8x32xf32>
    %249 = arith.mulf %246, %248 : vector<8x32xf32>
    %cst_77 = arith.constant dense<0.000000e+00> : vector<8xf32>
    %250 = vector.multi_reduction <add>, %249, %cst_77 [1] : vector<8x32xf32> to vector<8xf32>
    %251 = vector.shape_cast %250 : vector<8xf32> to vector<8x1xf32>
    %cst_78 = arith.constant 3.200000e+01 : f32
    %252 = vector.broadcast %cst_78 : f32 to vector<8x1xf32>
    %253 = arith.divf %251, %252 : vector<8x1xf32>
    %254 = vector.broadcast %244 : vector<8x1xf32> to vector<8x32xf32>
    %255 = arith.subf %238, %254 : vector<8x32xf32>
    %cst_79 = arith.constant 9.99999974E-6 : f32
    %256 = vector.broadcast %cst_79 : f32 to vector<8x1xf32>
    %257 = arith.addf %253, %256 : vector<8x1xf32>
    %258 = math.rsqrt %257 : vector<8x1xf32>
    %259 = vector.broadcast %258 : vector<8x1xf32> to vector<8x32xf32>
    %260 = arith.mulf %255, %259 : vector<8x32xf32>
    %261 = vector.broadcast %239 : vector<1x32xf32> to vector<8x32xf32>
    %262 = arith.mulf %260, %261 : vector<8x32xf32>
    %263 = vector.broadcast %240 : vector<1x32xf32> to vector<8x32xf32>
    %264 = arith.addf %262, %263 : vector<8x32xf32>
    %c1_80 = arith.constant 1 : index
    %c0_81 = arith.constant 0 : index
    %c0_82 = arith.constant 0 : index
    %265 = vector.load %arg8[%c1_80, %c0_81, %c0_82] : memref<3x32x64xf32, #tpu.memory_space<vmem>>, vector<1x32x64xf32>
    %266 = vector.shape_cast %265 : vector<1x32x64xf32> to vector<32x64xf32>
    %cst_83 = arith.constant dense<0.000000e+00> : vector<8x64xf32>
    %267 = tpu.matmul %264, %266, %cst_83 {dimension_numbers = #tpu.dot_dimension_numbers<[1], [0], [0], [1], [0, 0, 1, 1], [], []>} : vector<8x32xf32>, vector<32x64xf32>, vector<8x64xf32> -> vector<8x64xf32>
    %c1_84 = arith.constant 1 : index
    %c0_85 = arith.constant 0 : index
    %c0_86 = arith.constant 0 : index
    %268 = vector.load %arg11[%c1_84, %c0_85, %c0_86] : memref<3x1x64xf32, #tpu.memory_space<vmem>>, vector<1x1x64xf32>
    %269 = vector.shape_cast %268 : vector<1x1x64xf32> to vector<1x64xf32>
    %270 = vector.broadcast %269 : vector<1x64xf32> to vector<8x64xf32>
    %271 = arith.addf %267, %270 : vector<8x64xf32>
    %cst_87 = arith.constant 0.000000e+00 : f32
    %272 = vector.broadcast %cst_87 : f32 to vector<8x64xf32>
    %273 = arith.maximumf %271, %272 : vector<8x64xf32>
    %c1_88 = arith.constant 1 : index
    %c0_89 = arith.constant 0 : index
    %c0_90 = arith.constant 0 : index
    %274 = vector.load %arg9[%c1_88, %c0_89, %c0_90] : memref<3x64x32xf32, #tpu.memory_space<vmem>>, vector<1x64x32xf32>
    %275 = vector.shape_cast %274 : vector<1x64x32xf32> to vector<64x32xf32>
    %cst_91 = arith.constant dense<0.000000e+00> : vector<8x32xf32>
    %276 = tpu.matmul %273, %275, %cst_91 {dimension_numbers = #tpu.dot_dimension_numbers<[1], [0], [0], [1], [0, 0, 1, 1], [], []>} : vector<8x64xf32>, vector<64x32xf32>, vector<8x32xf32> -> vector<8x32xf32>
    %277 = vector.extract_strided_slice %163 {offsets = [4, 0], sizes = [1, 32], strides = [1, 1]} : vector<11x32xf32> to vector<1x32xf32>
    %278 = vector.broadcast %277 : vector<1x32xf32> to vector<8x32xf32>
    %279 = arith.addf %276, %278 : vector<8x32xf32>
    %280 = arith.addf %264, %279 : vector<8x32xf32>
    %281 = vector.extract_strided_slice %163 {offsets = [7, 0], sizes = [1, 32], strides = [1, 1]} : vector<11x32xf32> to vector<1x32xf32>
    %282 = vector.extract_strided_slice %163 {offsets = [8, 0], sizes = [1, 32], strides = [1, 1]} : vector<11x32xf32> to vector<1x32xf32>
    %cst_92 = arith.constant dense<0.000000e+00> : vector<8xf32>
    %283 = vector.multi_reduction <add>, %280, %cst_92 [1] : vector<8x32xf32> to vector<8xf32>
    %284 = vector.shape_cast %283 : vector<8xf32> to vector<8x1xf32>
    %cst_93 = arith.constant 3.200000e+01 : f32
    %285 = vector.broadcast %cst_93 : f32 to vector<8x1xf32>
    %286 = arith.divf %284, %285 : vector<8x1xf32>
    %287 = vector.broadcast %286 : vector<8x1xf32> to vector<8x32xf32>
    %288 = arith.subf %280, %287 : vector<8x32xf32>
    %289 = vector.broadcast %286 : vector<8x1xf32> to vector<8x32xf32>
    %290 = arith.subf %280, %289 : vector<8x32xf32>
    %291 = arith.mulf %288, %290 : vector<8x32xf32>
    %cst_94 = arith.constant dense<0.000000e+00> : vector<8xf32>
    %292 = vector.multi_reduction <add>, %291, %cst_94 [1] : vector<8x32xf32> to vector<8xf32>
    %293 = vector.shape_cast %292 : vector<8xf32> to vector<8x1xf32>
    %cst_95 = arith.constant 3.200000e+01 : f32
    %294 = vector.broadcast %cst_95 : f32 to vector<8x1xf32>
    %295 = arith.divf %293, %294 : vector<8x1xf32>
    %296 = vector.broadcast %286 : vector<8x1xf32> to vector<8x32xf32>
    %297 = arith.subf %280, %296 : vector<8x32xf32>
    %cst_96 = arith.constant 9.99999974E-6 : f32
    %298 = vector.broadcast %cst_96 : f32 to vector<8x1xf32>
    %299 = arith.addf %295, %298 : vector<8x1xf32>
    %300 = math.rsqrt %299 : vector<8x1xf32>
    %301 = vector.broadcast %300 : vector<8x1xf32> to vector<8x32xf32>
    %302 = arith.mulf %297, %301 : vector<8x32xf32>
    %303 = vector.broadcast %281 : vector<1x32xf32> to vector<8x32xf32>
    %304 = arith.mulf %302, %303 : vector<8x32xf32>
    %305 = vector.broadcast %282 : vector<1x32xf32> to vector<8x32xf32>
    %306 = arith.addf %304, %305 : vector<8x32xf32>
    %307 = vector.extract_strided_slice %163 {offsets = [9, 0], sizes = [1, 32], strides = [1, 1]} : vector<11x32xf32> to vector<1x32xf32>
    %308 = vector.broadcast %307 : vector<1x32xf32> to vector<8x32xf32>
    %309 = arith.mulf %306, %308 : vector<8x32xf32>
    %310 = vector.extract_strided_slice %163 {offsets = [10, 0], sizes = [1, 32], strides = [1, 1]} : vector<11x32xf32> to vector<1x32xf32>
    %311 = vector.broadcast %310 : vector<1x32xf32> to vector<8x32xf32>
    %312 = arith.addf %309, %311 : vector<8x32xf32>
    %c2 = arith.constant 2 : index
    %c0_97 = arith.constant 0 : index
    %c0_98 = arith.constant 0 : index
    %313 = vector.load %arg10[%c2, %c0_97, %c0_98] : memref<3x11x32xf32, #tpu.memory_space<vmem>>, vector<1x11x32xf32>
    %314 = vector.shape_cast %313 : vector<1x11x32xf32> to vector<11x32xf32>
    %c2_99 = arith.constant 2 : index
    %c0_100 = arith.constant 0 : index
    %c0_101 = arith.constant 0 : index
    %315 = vector.load %arg4[%c2_99, %c0_100, %c0_101] : memref<3x32x32xf32, #tpu.memory_space<vmem>>, vector<1x32x32xf32>
    %316 = vector.shape_cast %315 : vector<1x32x32xf32> to vector<32x32xf32>
    %cst_102 = arith.constant dense<0.000000e+00> : vector<8x32xf32>
    %317 = tpu.matmul %312, %316, %cst_102 {dimension_numbers = #tpu.dot_dimension_numbers<[1], [0], [0], [1], [0, 0, 1, 1], [], []>} : vector<8x32xf32>, vector<32x32xf32>, vector<8x32xf32> -> vector<8x32xf32>
    %318 = vector.extract_strided_slice %314 {offsets = [0, 0], sizes = [1, 32], strides = [1, 1]} : vector<11x32xf32> to vector<1x32xf32>
    %319 = vector.broadcast %318 : vector<1x32xf32> to vector<8x32xf32>
    %320 = arith.addf %317, %319 : vector<8x32xf32>
    %c2_103 = arith.constant 2 : index
    %c0_104 = arith.constant 0 : index
    %c0_105 = arith.constant 0 : index
    %321 = vector.load %arg5[%c2_103, %c0_104, %c0_105] : memref<3x32x32xf32, #tpu.memory_space<vmem>>, vector<1x32x32xf32>
    %322 = vector.shape_cast %321 : vector<1x32x32xf32> to vector<32x32xf32>
    %cst_106 = arith.constant dense<0.000000e+00> : vector<8x32xf32>
    %323 = tpu.matmul %312, %322, %cst_106 {dimension_numbers = #tpu.dot_dimension_numbers<[1], [0], [0], [1], [0, 0, 1, 1], [], []>} : vector<8x32xf32>, vector<32x32xf32>, vector<8x32xf32> -> vector<8x32xf32>
    %324 = vector.extract_strided_slice %314 {offsets = [1, 0], sizes = [1, 32], strides = [1, 1]} : vector<11x32xf32> to vector<1x32xf32>
    %325 = vector.broadcast %324 : vector<1x32xf32> to vector<8x32xf32>
    %326 = arith.addf %323, %325 : vector<8x32xf32>
    %c2_107 = arith.constant 2 : index
    %c0_108 = arith.constant 0 : index
    %c0_109 = arith.constant 0 : index
    %327 = vector.load %arg6[%c2_107, %c0_108, %c0_109] : memref<3x32x32xf32, #tpu.memory_space<vmem>>, vector<1x32x32xf32>
    %328 = vector.shape_cast %327 : vector<1x32x32xf32> to vector<32x32xf32>
    %cst_110 = arith.constant dense<0.000000e+00> : vector<8x32xf32>
    %329 = tpu.matmul %312, %328, %cst_110 {dimension_numbers = #tpu.dot_dimension_numbers<[1], [0], [0], [1], [0, 0, 1, 1], [], []>} : vector<8x32xf32>, vector<32x32xf32>, vector<8x32xf32> -> vector<8x32xf32>
    %330 = vector.extract_strided_slice %314 {offsets = [2, 0], sizes = [1, 32], strides = [1, 1]} : vector<11x32xf32> to vector<1x32xf32>
    %331 = vector.broadcast %330 : vector<1x32xf32> to vector<8x32xf32>
    %332 = arith.addf %329, %331 : vector<8x32xf32>
    %333 = vector.extract_strided_slice %320 {offsets = [0, 0], sizes = [8, 8], strides = [1, 1]} : vector<8x32xf32> to vector<8x8xf32>
    %334 = vector.extract_strided_slice %320 {offsets = [0, 8], sizes = [8, 8], strides = [1, 1]} : vector<8x32xf32> to vector<8x8xf32>
    %335 = vector.extract_strided_slice %320 {offsets = [0, 16], sizes = [8, 8], strides = [1, 1]} : vector<8x32xf32> to vector<8x8xf32>
    %336 = vector.extract_strided_slice %320 {offsets = [0, 24], sizes = [8, 8], strides = [1, 1]} : vector<8x32xf32> to vector<8x8xf32>
    %337 = vector.shape_cast %333 : vector<8x8xf32> to vector<1x8x8xf32>
    %338 = vector.shape_cast %334 : vector<8x8xf32> to vector<1x8x8xf32>
    %339 = vector.shape_cast %335 : vector<8x8xf32> to vector<1x8x8xf32>
    %340 = vector.shape_cast %336 : vector<8x8xf32> to vector<1x8x8xf32>
    %341 = tpu.concatenate %337, %338, %339, %340 in 0 : vector<1x8x8xf32>, vector<1x8x8xf32>, vector<1x8x8xf32>, vector<1x8x8xf32> -> vector<4x8x8xf32>
    %342 = vector.extract_strided_slice %326 {offsets = [0, 0], sizes = [8, 8], strides = [1, 1]} : vector<8x32xf32> to vector<8x8xf32>
    %343 = vector.extract_strided_slice %326 {offsets = [0, 8], sizes = [8, 8], strides = [1, 1]} : vector<8x32xf32> to vector<8x8xf32>
    %344 = vector.extract_strided_slice %326 {offsets = [0, 16], sizes = [8, 8], strides = [1, 1]} : vector<8x32xf32> to vector<8x8xf32>
    %345 = vector.extract_strided_slice %326 {offsets = [0, 24], sizes = [8, 8], strides = [1, 1]} : vector<8x32xf32> to vector<8x8xf32>
    %346 = vector.shape_cast %342 : vector<8x8xf32> to vector<1x8x8xf32>
    %347 = vector.shape_cast %343 : vector<8x8xf32> to vector<1x8x8xf32>
    %348 = vector.shape_cast %344 : vector<8x8xf32> to vector<1x8x8xf32>
    %349 = vector.shape_cast %345 : vector<8x8xf32> to vector<1x8x8xf32>
    %350 = tpu.concatenate %346, %347, %348, %349 in 0 : vector<1x8x8xf32>, vector<1x8x8xf32>, vector<1x8x8xf32>, vector<1x8x8xf32> -> vector<4x8x8xf32>
    %351 = vector.extract_strided_slice %332 {offsets = [0, 0], sizes = [8, 8], strides = [1, 1]} : vector<8x32xf32> to vector<8x8xf32>
    %352 = vector.extract_strided_slice %332 {offsets = [0, 8], sizes = [8, 8], strides = [1, 1]} : vector<8x32xf32> to vector<8x8xf32>
    %353 = vector.extract_strided_slice %332 {offsets = [0, 16], sizes = [8, 8], strides = [1, 1]} : vector<8x32xf32> to vector<8x8xf32>
    %354 = vector.extract_strided_slice %332 {offsets = [0, 24], sizes = [8, 8], strides = [1, 1]} : vector<8x32xf32> to vector<8x8xf32>
    %355 = vector.shape_cast %351 : vector<8x8xf32> to vector<1x8x8xf32>
    %356 = vector.shape_cast %352 : vector<8x8xf32> to vector<1x8x8xf32>
    %357 = vector.shape_cast %353 : vector<8x8xf32> to vector<1x8x8xf32>
    %358 = vector.shape_cast %354 : vector<8x8xf32> to vector<1x8x8xf32>
    %359 = tpu.concatenate %355, %356, %357, %358 in 0 : vector<1x8x8xf32>, vector<1x8x8xf32>, vector<1x8x8xf32>, vector<1x8x8xf32> -> vector<4x8x8xf32>
    "tpu.trace_start"() <{level = 10 : i32, message = "hsd,htd->hst"}> : () -> ()
    %cst_111 = arith.constant dense<0.000000e+00> : vector<4x8x8xf32>
    %360 = tpu.matmul %341, %350, %cst_111 {dimension_numbers = #tpu.dot_dimension_numbers<[2], [2], [1], [1], [0, 0, 0, 1, 1, 1], [0], [0]>} : vector<4x8x8xf32>, vector<4x8x8xf32>, vector<4x8x8xf32> -> vector<4x8x8xf32>
    "tpu.trace_stop"() : () -> ()
    %cst_112 = arith.constant 0.353553385 : f32
    %361 = vector.broadcast %cst_112 : f32 to vector<4x8x8xf32>
    %362 = arith.mulf %360, %361 : vector<4x8x8xf32>
    %cst_113 = arith.constant dense<0xFF800000> : vector<4x8xf32>
    %363 = vector.multi_reduction <maximumf>, %362, %cst_113 [2] : vector<4x8x8xf32> to vector<4x8xf32>
    %364 = vector.shape_cast %363 : vector<4x8xf32> to vector<4x8x1xf32>
    %365 = vector.broadcast %364 : vector<4x8x1xf32> to vector<4x8x8xf32>
    %366 = arith.subf %362, %365 : vector<4x8x8xf32>
    %367 = math.exp %366 : vector<4x8x8xf32>
    %cst_114 = arith.constant dense<0.000000e+00> : vector<4x8xf32>
    %368 = vector.multi_reduction <add>, %367, %cst_114 [2] : vector<4x8x8xf32> to vector<4x8xf32>
    %369 = vector.shape_cast %368 : vector<4x8xf32> to vector<4x8x1xf32>
    %370 = tpu.reciprocal %369 {approx = true} : vector<4x8x1xf32> -> vector<4x8x1xf32>
    %371 = vector.broadcast %370 : vector<4x8x1xf32> to vector<4x8x8xf32>
    %372 = arith.mulf %367, %371 : vector<4x8x8xf32>
    "tpu.trace_start"() <{level = 10 : i32, message = "hst,htd->hsd"}> : () -> ()
    %cst_115 = arith.constant dense<0.000000e+00> : vector<4x8x8xf32>
    %373 = tpu.matmul %372, %359, %cst_115 {dimension_numbers = #tpu.dot_dimension_numbers<[2], [1], [1], [2], [0, 0, 0, 1, 1, 2], [0], [0]>} : vector<4x8x8xf32>, vector<4x8x8xf32>, vector<4x8x8xf32> -> vector<4x8x8xf32>
    "tpu.trace_stop"() : () -> ()
    %374 = vector.extract_strided_slice %373 {offsets = [0, 0, 0], sizes = [1, 8, 8], strides = [1, 1, 1]} : vector<4x8x8xf32> to vector<1x8x8xf32>
    %375 = vector.shape_cast %374 : vector<1x8x8xf32> to vector<8x8xf32>
    %376 = vector.extract_strided_slice %373 {offsets = [1, 0, 0], sizes = [1, 8, 8], strides = [1, 1, 1]} : vector<4x8x8xf32> to vector<1x8x8xf32>
    %377 = vector.shape_cast %376 : vector<1x8x8xf32> to vector<8x8xf32>
    %378 = vector.extract_strided_slice %373 {offsets = [2, 0, 0], sizes = [1, 8, 8], strides = [1, 1, 1]} : vector<4x8x8xf32> to vector<1x8x8xf32>
    %379 = vector.shape_cast %378 : vector<1x8x8xf32> to vector<8x8xf32>
    %380 = vector.extract_strided_slice %373 {offsets = [3, 0, 0], sizes = [1, 8, 8], strides = [1, 1, 1]} : vector<4x8x8xf32> to vector<1x8x8xf32>
    %381 = vector.shape_cast %380 : vector<1x8x8xf32> to vector<8x8xf32>
    %382 = tpu.concatenate %375, %377, %379, %381 in 1 : vector<8x8xf32>, vector<8x8xf32>, vector<8x8xf32>, vector<8x8xf32> -> vector<8x32xf32>
    %c2_116 = arith.constant 2 : index
    %c0_117 = arith.constant 0 : index
    %c0_118 = arith.constant 0 : index
    %383 = vector.load %arg7[%c2_116, %c0_117, %c0_118] : memref<3x32x32xf32, #tpu.memory_space<vmem>>, vector<1x32x32xf32>
    %384 = vector.shape_cast %383 : vector<1x32x32xf32> to vector<32x32xf32>
    %cst_119 = arith.constant dense<0.000000e+00> : vector<8x32xf32>
    %385 = tpu.matmul %382, %384, %cst_119 {dimension_numbers = #tpu.dot_dimension_numbers<[1], [0], [0], [1], [0, 0, 1, 1], [], []>} : vector<8x32xf32>, vector<32x32xf32>, vector<8x32xf32> -> vector<8x32xf32>
    %386 = vector.extract_strided_slice %314 {offsets = [3, 0], sizes = [1, 32], strides = [1, 1]} : vector<11x32xf32> to vector<1x32xf32>
    %387 = vector.broadcast %386 : vector<1x32xf32> to vector<8x32xf32>
    %388 = arith.addf %385, %387 : vector<8x32xf32>
    %389 = arith.addf %312, %388 : vector<8x32xf32>
    %390 = vector.extract_strided_slice %314 {offsets = [5, 0], sizes = [1, 32], strides = [1, 1]} : vector<11x32xf32> to vector<1x32xf32>
    %391 = vector.extract_strided_slice %314 {offsets = [6, 0], sizes = [1, 32], strides = [1, 1]} : vector<11x32xf32> to vector<1x32xf32>
    %cst_120 = arith.constant dense<0.000000e+00> : vector<8xf32>
    %392 = vector.multi_reduction <add>, %389, %cst_120 [1] : vector<8x32xf32> to vector<8xf32>
    %393 = vector.shape_cast %392 : vector<8xf32> to vector<8x1xf32>
    %cst_121 = arith.constant 3.200000e+01 : f32
    %394 = vector.broadcast %cst_121 : f32 to vector<8x1xf32>
    %395 = arith.divf %393, %394 : vector<8x1xf32>
    %396 = vector.broadcast %395 : vector<8x1xf32> to vector<8x32xf32>
    %397 = arith.subf %389, %396 : vector<8x32xf32>
    %398 = vector.broadcast %395 : vector<8x1xf32> to vector<8x32xf32>
    %399 = arith.subf %389, %398 : vector<8x32xf32>
    %400 = arith.mulf %397, %399 : vector<8x32xf32>
    %cst_122 = arith.constant dense<0.000000e+00> : vector<8xf32>
    %401 = vector.multi_reduction <add>, %400, %cst_122 [1] : vector<8x32xf32> to vector<8xf32>
    %402 = vector.shape_cast %401 : vector<8xf32> to vector<8x1xf32>
    %cst_123 = arith.constant 3.200000e+01 : f32
    %403 = vector.broadcast %cst_123 : f32 to vector<8x1xf32>
    %404 = arith.divf %402, %403 : vector<8x1xf32>
    %405 = vector.broadcast %395 : vector<8x1xf32> to vector<8x32xf32>
    %406 = arith.subf %389, %405 : vector<8x32xf32>
    %cst_124 = arith.constant 9.99999974E-6 : f32
    %407 = vector.broadcast %cst_124 : f32 to vector<8x1xf32>
    %408 = arith.addf %404, %407 : vector<8x1xf32>
    %409 = math.rsqrt %408 : vector<8x1xf32>
    %410 = vector.broadcast %409 : vector<8x1xf32> to vector<8x32xf32>
    %411 = arith.mulf %406, %410 : vector<8x32xf32>
    %412 = vector.broadcast %390 : vector<1x32xf32> to vector<8x32xf32>
    %413 = arith.mulf %411, %412 : vector<8x32xf32>
    %414 = vector.broadcast %391 : vector<1x32xf32> to vector<8x32xf32>
    %415 = arith.addf %413, %414 : vector<8x32xf32>
    %c2_125 = arith.constant 2 : index
    %c0_126 = arith.constant 0 : index
    %c0_127 = arith.constant 0 : index
    %416 = vector.load %arg8[%c2_125, %c0_126, %c0_127] : memref<3x32x64xf32, #tpu.memory_space<vmem>>, vector<1x32x64xf32>
    %417 = vector.shape_cast %416 : vector<1x32x64xf32> to vector<32x64xf32>
    %cst_128 = arith.constant dense<0.000000e+00> : vector<8x64xf32>
    %418 = tpu.matmul %415, %417, %cst_128 {dimension_numbers = #tpu.dot_dimension_numbers<[1], [0], [0], [1], [0, 0, 1, 1], [], []>} : vector<8x32xf32>, vector<32x64xf32>, vector<8x64xf32> -> vector<8x64xf32>
    %c2_129 = arith.constant 2 : index
    %c0_130 = arith.constant 0 : index
    %c0_131 = arith.constant 0 : index
    %419 = vector.load %arg11[%c2_129, %c0_130, %c0_131] : memref<3x1x64xf32, #tpu.memory_space<vmem>>, vector<1x1x64xf32>
    %420 = vector.shape_cast %419 : vector<1x1x64xf32> to vector<1x64xf32>
    %421 = vector.broadcast %420 : vector<1x64xf32> to vector<8x64xf32>
    %422 = arith.addf %418, %421 : vector<8x64xf32>
    %cst_132 = arith.constant 0.000000e+00 : f32
    %423 = vector.broadcast %cst_132 : f32 to vector<8x64xf32>
    %424 = arith.maximumf %422, %423 : vector<8x64xf32>
    %c2_133 = arith.constant 2 : index
    %c0_134 = arith.constant 0 : index
    %c0_135 = arith.constant 0 : index
    %425 = vector.load %arg9[%c2_133, %c0_134, %c0_135] : memref<3x64x32xf32, #tpu.memory_space<vmem>>, vector<1x64x32xf32>
    %426 = vector.shape_cast %425 : vector<1x64x32xf32> to vector<64x32xf32>
    %cst_136 = arith.constant dense<0.000000e+00> : vector<8x32xf32>
    %427 = tpu.matmul %424, %426, %cst_136 {dimension_numbers = #tpu.dot_dimension_numbers<[1], [0], [0], [1], [0, 0, 1, 1], [], []>} : vector<8x64xf32>, vector<64x32xf32>, vector<8x32xf32> -> vector<8x32xf32>
    %428 = vector.extract_strided_slice %314 {offsets = [4, 0], sizes = [1, 32], strides = [1, 1]} : vector<11x32xf32> to vector<1x32xf32>
    %429 = vector.broadcast %428 : vector<1x32xf32> to vector<8x32xf32>
    %430 = arith.addf %427, %429 : vector<8x32xf32>
    %431 = arith.addf %415, %430 : vector<8x32xf32>
    %432 = vector.extract_strided_slice %314 {offsets = [7, 0], sizes = [1, 32], strides = [1, 1]} : vector<11x32xf32> to vector<1x32xf32>
    %433 = vector.extract_strided_slice %314 {offsets = [8, 0], sizes = [1, 32], strides = [1, 1]} : vector<11x32xf32> to vector<1x32xf32>
    %cst_137 = arith.constant dense<0.000000e+00> : vector<8xf32>
    %434 = vector.multi_reduction <add>, %431, %cst_137 [1] : vector<8x32xf32> to vector<8xf32>
    %435 = vector.shape_cast %434 : vector<8xf32> to vector<8x1xf32>
    %cst_138 = arith.constant 3.200000e+01 : f32
    %436 = vector.broadcast %cst_138 : f32 to vector<8x1xf32>
    %437 = arith.divf %435, %436 : vector<8x1xf32>
    %438 = vector.broadcast %437 : vector<8x1xf32> to vector<8x32xf32>
    %439 = arith.subf %431, %438 : vector<8x32xf32>
    %440 = vector.broadcast %437 : vector<8x1xf32> to vector<8x32xf32>
    %441 = arith.subf %431, %440 : vector<8x32xf32>
    %442 = arith.mulf %439, %441 : vector<8x32xf32>
    %cst_139 = arith.constant dense<0.000000e+00> : vector<8xf32>
    %443 = vector.multi_reduction <add>, %442, %cst_139 [1] : vector<8x32xf32> to vector<8xf32>
    %444 = vector.shape_cast %443 : vector<8xf32> to vector<8x1xf32>
    %cst_140 = arith.constant 3.200000e+01 : f32
    %445 = vector.broadcast %cst_140 : f32 to vector<8x1xf32>
    %446 = arith.divf %444, %445 : vector<8x1xf32>
    %447 = vector.broadcast %437 : vector<8x1xf32> to vector<8x32xf32>
    %448 = arith.subf %431, %447 : vector<8x32xf32>
    %cst_141 = arith.constant 9.99999974E-6 : f32
    %449 = vector.broadcast %cst_141 : f32 to vector<8x1xf32>
    %450 = arith.addf %446, %449 : vector<8x1xf32>
    %451 = math.rsqrt %450 : vector<8x1xf32>
    %452 = vector.broadcast %451 : vector<8x1xf32> to vector<8x32xf32>
    %453 = arith.mulf %448, %452 : vector<8x32xf32>
    %454 = vector.broadcast %432 : vector<1x32xf32> to vector<8x32xf32>
    %455 = arith.mulf %453, %454 : vector<8x32xf32>
    %456 = vector.broadcast %433 : vector<1x32xf32> to vector<8x32xf32>
    %457 = arith.addf %455, %456 : vector<8x32xf32>
    %458 = vector.extract_strided_slice %314 {offsets = [9, 0], sizes = [1, 32], strides = [1, 1]} : vector<11x32xf32> to vector<1x32xf32>
    %459 = vector.broadcast %458 : vector<1x32xf32> to vector<8x32xf32>
    %460 = arith.mulf %457, %459 : vector<8x32xf32>
    %461 = vector.extract_strided_slice %314 {offsets = [10, 0], sizes = [1, 32], strides = [1, 1]} : vector<11x32xf32> to vector<1x32xf32>
    %462 = vector.broadcast %461 : vector<1x32xf32> to vector<8x32xf32>
    %463 = arith.addf %460, %462 : vector<8x32xf32>
    %cst_142 = arith.constant dense<0.000000e+00> : vector<32xf32>
    %464 = vector.multi_reduction <add>, %463, %cst_142 [0] : vector<8x32xf32> to vector<32xf32>
    %465 = vector.shape_cast %464 : vector<32xf32> to vector<1x32xf32>
    %cst_143 = arith.constant 1.250000e-01 : f32
    %466 = vector.broadcast %cst_143 : f32 to vector<1x32xf32>
    %467 = arith.mulf %465, %466 : vector<1x32xf32>
    %c0_144 = arith.constant 0 : index
    %c0_145 = arith.constant 0 : index
    %468 = vector.load %arg12[%c0_144, %c0_145] : memref<32x2xf32, #tpu.memory_space<vmem>>, vector<32x2xf32>
    %cst_146 = arith.constant dense<0.000000e+00> : vector<1x2xf32>
    %469 = tpu.matmul %467, %468, %cst_146 {dimension_numbers = #tpu.dot_dimension_numbers<[1], [0], [0], [1], [0, 0, 1, 1], [], []>} : vector<1x32xf32>, vector<32x2xf32>, vector<1x2xf32> -> vector<1x2xf32>
    %c0_147 = arith.constant 0 : index
    %c0_148 = arith.constant 0 : index
    %470 = vector.load %arg13[%c0_147, %c0_148] : memref<1x2xf32, #tpu.memory_space<vmem>>, vector<1x2xf32>
    %471 = arith.addf %469, %470 : vector<1x2xf32>
    %c0_149 = arith.constant 0 : index
    %c0_150 = arith.constant 0 : index
    %c0_151 = arith.constant 0 : index
    %472 = vector.load %arg14[%c0_149, %c0_150, %c0_151] : memref<1x1x2xf32, #tpu.memory_space<vmem>>, vector<1x1x2xf32>
    %473 = vector.shape_cast %472 : vector<1x1x2xf32> to vector<1x2xf32>
    %474 = vector.shape_cast %471 : vector<1x2xf32> to vector<1x1x2xf32>
    tpu.vector_store %arg14[%c0_149, %c0_150, %c0_151], %474 {strides = array<i32>} : memref<1x1x2xf32, #tpu.memory_space<vmem>>, vector<1x1x2xf32>,
    return
  }
  func.func @transform_0(%arg0: i32) -> (i32, i32, i32) {
    %c0_i32 = arith.constant 0 : i32
    %c0_i32_0 = arith.constant 0 : i32
    %c0_i32_1 = arith.constant 0 : i32
    return %arg0, %c0_i32, %c0_i32_0 : i32, i32, i32
  }
  func.func @transform_1(%arg0: i32) -> (i32, i32) {
    %c0_i32 = arith.constant 0 : i32
    %c0_i32_0 = arith.constant 0 : i32
    %c0_i32_1 = arith.constant 0 : i32
    return %c0_i32, %c0_i32_0 : i32, i32
  }
  func.func @transform_2(%arg0: i32) -> (i32, i32) {
    %c0_i32 = arith.constant 0 : i32
    %c0_i32_0 = arith.constant 0 : i32
    %c0_i32_1 = arith.constant 0 : i32
    return %c0_i32, %c0_i32_0 : i32, i32
  }
  func.func @transform_3(%arg0: i32) -> (i32, i32, i32) {
    %c0_i32 = arith.constant 0 : i32
    %c0_i32_0 = arith.constant 0 : i32
    %c0_i32_1 = arith.constant 0 : i32
    %c0_i32_2 = arith.constant 0 : i32
    return %c0_i32, %c0_i32_0, %c0_i32_1 : i32, i32, i32
  }
  func.func @transform_4(%arg0: i32) -> (i32, i32, i32) {
    %c0_i32 = arith.constant 0 : i32
    %c0_i32_0 = arith.constant 0 : i32
    %c0_i32_1 = arith.constant 0 : i32
    %c0_i32_2 = arith.constant 0 : i32
    return %c0_i32, %c0_i32_0, %c0_i32_1 : i32, i32, i32
  }
  func.func @transform_5(%arg0: i32) -> (i32, i32, i32) {
    %c0_i32 = arith.constant 0 : i32
    %c0_i32_0 = arith.constant 0 : i32
    %c0_i32_1 = arith.constant 0 : i32
    %c0_i32_2 = arith.constant 0 : i32
    return %c0_i32, %c0_i32_0, %c0_i32_1 : i32, i32, i32
  }
  func.func @transform_6(%arg0: i32) -> (i32, i32, i32) {
    %c0_i32 = arith.constant 0 : i32
    %c0_i32_0 = arith.constant 0 : i32
    %c0_i32_1 = arith.constant 0 : i32
    %c0_i32_2 = arith.constant 0 : i32
    return %c0_i32, %c0_i32_0, %c0_i32_1 : i32, i32, i32
  }
  func.func @transform_7(%arg0: i32) -> (i32, i32, i32) {
    %c0_i32 = arith.constant 0 : i32
    %c0_i32_0 = arith.constant 0 : i32
    %c0_i32_1 = arith.constant 0 : i32
    %c0_i32_2 = arith.constant 0 : i32
    return %c0_i32, %c0_i32_0, %c0_i32_1 : i32, i32, i32
  }
  func.func @transform_8(%arg0: i32) -> (i32, i32, i32) {
    %c0_i32 = arith.constant 0 : i32
    %c0_i32_0 = arith.constant 0 : i32
    %c0_i32_1 = arith.constant 0 : i32
    %c0_i32_2 = arith.constant 0 : i32
    return %c0_i32, %c0_i32_0, %c0_i32_1 : i32, i32, i32
  }
  func.func @transform_9(%arg0: i32) -> (i32, i32, i32) {
    %c0_i32 = arith.constant 0 : i32
    %c0_i32_0 = arith.constant 0 : i32
    %c0_i32_1 = arith.constant 0 : i32
    %c0_i32_2 = arith.constant 0 : i32
    return %c0_i32, %c0_i32_0, %c0_i32_1 : i32, i32, i32
  }
  func.func @transform_10(%arg0: i32) -> (i32, i32, i32) {
    %c0_i32 = arith.constant 0 : i32
    %c0_i32_0 = arith.constant 0 : i32
    %c0_i32_1 = arith.constant 0 : i32
    %c0_i32_2 = arith.constant 0 : i32
    return %c0_i32, %c0_i32_0, %c0_i32_1 : i32, i32, i32
  }
  func.func @transform_11(%arg0: i32) -> (i32, i32) {
    %c0_i32 = arith.constant 0 : i32
    %c0_i32_0 = arith.constant 0 : i32
    %c0_i32_1 = arith.constant 0 : i32
    return %c0_i32, %c0_i32_0 : i32, i32
  }
  func.func @transform_12(%arg0: i32) -> (i32, i32) {
    %c0_i32 = arith.constant 0 : i32
    %c0_i32_0 = arith.constant 0 : i32
    %c0_i32_1 = arith.constant 0 : i32
    return %c0_i32, %c0_i32_0 : i32, i32
  }
  func.func @transform_13(%arg0: i32) -> (i32, i32, i32) {
    %c0_i32 = arith.constant 0 : i32
    %c0_i32_0 = arith.constant 0 : i32
    %c0_i32_1 = arith.constant 0 : i32
    return %arg0, %c0_i32, %c0_i32_0 : i32, i32, i32
  }
}

</mosaic_0001>

<bundles_post_ra>
// kernel: tpu_custom_call.1
= control target key start
LH: loop header
LB: loop body
LE: loop exit
PB: predicated region body
PF: predicated region fallthrough
CT: control target
= control target key end

     0   :  { %s6435_s0 = inlined_call_operand.vmem [shape: s32[2,8,1], index: 0, kind: input, shape index: {}]   ;;  %s6436_s1 = inlined_call_operand.vmem [shape: f32[100,32], index: 1, kind: input, shape index: {}]   ;;  %s6437_s2 = inlined_call_operand.hbm [shape: f32[8,32], index: 2, kind: input, shape index: {}]   ;;  %s6438_s3 = inlined_call_operand.vmem [shape: f32[3,32,32], index: 3, kind: input, shape index: {}]   ;;  %s6439_s4 = inlined_call_operand.vmem [shape: f32[3,32,32], index: 4, kind: input, shape index: {}]   ;;  %s6440_s5 = inlined_call_operand.vmem [shape: f32[3,32,32], index: 5, kind: input, shape index: {}]   ;;  %s6441_s6 = inlined_call_operand.vmem [shape: f32[3,32,32], index: 6, kind: input, shape index: {}]   ;;  %s6442_s7 = inlined_call_operand.vmem [shape: f32[3,32,64], index: 7, kind: input, shape index: {}]   ;;  %s6443_s8 = inlined_call_operand.vmem [shape: f32[3,64,32], index: 8, kind: input, shape index: {}]   ;;  %s6444_s9 = inlined_call_operand.vmem [shape: f32[3,11,32], index: 9, kind: input, shape index: {}]   ;;  %s6445_s10 = inlined_call_operand.vmem [shape: f32[3,1,64], index: 10, kind: input, shape index: {}]   ;;  %s6446_s11 = inlined_call_operand.vmem [shape: f32[32,2], index: 11, kind: input, shape index: {}]   ;;  %s6447_s12 = inlined_call_operand.vmem [shape: f32[1,2], index: 12, kind: input, shape index: {}]   ;;  %s6448_s13 = inlined_call_operand.hbm [shape: f32[2,1,2], index: 13, kind: output, shape index: {}]  }
   0x1   :  { %6467 = sst [smem:[#allocation11_spill]] %s6435_s0 }
   0x2   :  { %6468 = sst [smem:[#allocation12_spill]] %s6436_s1 }
   0x3   :  { %6469 = sst [smem:[#allocation13_spill]] %s6437_s2 }
   0x4   :  { %18 = vsyncpa [#allocation3], 0 }
   0x5   :  { %19 = vsyncpa [#allocation4], 0 }
   0x6   :  { %21 = vsyncpa [#allocation4 + $0x1], 0  ;;  %s5541_s25 = smov 0   ;;  %s5543_s26 = smov 0  }
   0x7   :  { %s5545_s27 = smov 0   ;;  %s5547_s28 = smov 0  }
   0x8 LB: > { %6470 = sst [smem:[#allocation8_spill]] %s5453_s27  ;;  %s5562_s29 = sadd.s32 4294967295, %s5457_s28   ;;  %s5457_s28 = sphi %s5547_s28, %s6491_s28   ;;  %s5453_s27 = sphi %s5545_s27, %s6493_s27   ;;  %s5449_s26 = sphi %s5543_s26, %s6495_s26   ;;  %s5445_s25 = sphi %s5541_s25, %s6494_s25  }
   0x9   : > { %s4408_s30 = sadd.s32 4294967294, %s5457_s28   ;;  %s5566_s14 = sadd.s32 1, %s5457_s28  }
   0xa   : > { %6471 = sst [smem:[#allocation9_spill]] %s5566_s14  ;;  %s312_s15 = sadd.s32 1, %s5453_s27 }
   0xb   : > { %s309_s16 = ssub.s32 %s5457_s28, %s5566_s14  ;;  %p322_p0 = scmp.ne.s32.totalorder %s5453_s27, %s5449_s26 }
   0xc   : > { %p310_p1 = scmp.eq.s32.totalorder %s309_s16, 0  ;;  %p323_p2 = scmp.eq.s32.totalorder %s5562_s29, 1 }
   0xd   : > { %p328_p3 = scmp.ne.s32.totalorder %s5449_s26, %s5445_s25  ;;  %p329_p4 = scmp.eq.s32.totalorder %s4408_s30, 1 }
   0xe   : > { %s5577_s17 = scalar_select %p310_p1, %s5453_s27, %s312_s15  }
   0xf   : > { %p5579_p5 = por %p323_p2, %p322_p0  ;;  %p5583_p6 = por %p329_p4, %p328_p3 }
  0x10   : > { %6472 = sst [smem:[#allocation10_spill]] %s5577_s17  ;;  %p4409_p7 = scmp.ge.s32.totalorder %s5457_s28, 1 }
  0x11   : > { %s6473_s18 = scalar_select %p5579_p5, 1, 0 }
  0x12   : > { %s6474_s19 = scalar_select %p5583_p6, 1, 0 }
  0x13   : > { %p336_p8 = scmp.lt.s32.totalorder %s5457_s28, 3  ;;  %p6452_p9 = scmp.eq.s32.totalorder %s5562_s29, 0 }
  0x14   : > { %s5459_s21 = smov [#allocation2]   ;;  %s6477_s2 = sld [smem:[#allocation13_spill]] }
  0x15   : > { %p5590_p10 = pnand %p4409_p7, %p336_p8  ;;  %s352_s22 = sshll.u32 %s5459_s21, 4  ;;  %s353_s22 = int_to_ptr.vmem [resolvable:$true] %s352_s22 }
  0x17   : > { %s6475_s20 = scalar_select %p5590_p10, 1, 0 }
  0x18   : > { %p5248_p11 = pneg %p5590_p10 }
  0x1a   : > { %p5598_p12 = pnand %p6452_p9, %p5248_p11  ;;  %s5363_s15 = scalar_lea.hbm %s6477_s2, 128 }
  0x1b   : > { %p5364_p13 = scmp.ne.s32.totalorder %s6477_s2, %s5363_s15  ;;  %p5370_p3 = scmp.lt.u32.totalorder %s5363_s15, %s6477_s2 }
  0x1c   : > { %p5365_p0 = pneg %p5598_p12 }
  0x1e   : > { %p5366_p1 = pnand %p5365_p0, %p5364_p13 }
  0x20   : > { %p5367_p2 = pneg %p5366_p1 }
  0x22   : > { %p5372_p4 = pnand %p5370_p3, %p5367_p2 }
  0x24   : > { %5375 = shalt.err (!%p5372_p4)
}
  0x25   : > { %s5376_s14 = scalar_lea.vmem %s353_s22, 128  ;;  %p5384_p9 = scmp.lt.s32.totalorder %s353_s22, %s353_s22 }
  0x26   : > { %p5377_p7 = scmp.ne.s32.totalorder %s353_s22, %s5376_s14  ;;  %p5385_p6 = scmp.lt.s32.totalorder %s5376_s14, %s5376_s14 }
  0x28   : > { %p5379_p8 = pnand %p5377_p7, %p5365_p0  ;;  %p5386_p5 = por %p5385_p6, %p5384_p9 }
  0x2a   : > { %p5380_p11 = pneg %p5379_p8 }
  0x2c   : > { %p5387_p10 = pnand %p5386_p5, %p5380_p11 }
  0x2e   : > { %5390 = shalt.err (!%p5387_p10)
}
  0x2f   : > { %5251 = dma.hbm_to_vmem [thread:$0]  (!%p5598_p12), %s6477_s2, 128, %s353_s22, [#allocation3]  }
  0x30   : > { %p6478_p13 = scmp.ne.s32.totalorder %s6475_s20, 0 }
  0x31   : > { %p6479_p1 = scmp.eq.s32.totalorder (!%p6478_p13), %s5562_s29, 0 }
  0x32   : > { %402 = sbr.rel (%p6478_p13) target bundleno = 8234 (0x202a), region = 72 }
  0x39   : > { %5436 = dma.done.wait (%p6479_p1), [#allocation3], 128   ;;  %p6480_p0 = pmov %p6479_p1 }
  0x3a   : > { %p444_p6 = scmp.lt.s32.totalorder %s5562_s29, 1  ;;  %v5460_v0 = vmov 0   ;;  %v5461_v1 = vmov 0.0|0.0   ;;  %s6481_s0 = sld [smem:[#allocation11_spill]]  ;;  %vm5462_vm0 = vmmov 0   ;;  %v5463_v8 = vmov 0.0  }
  0x3b   : > { %5438 = vsyncadd (%p6480_p0), [#allocation3], 4294967168  ;;  %5302 = vset.pattern.permute.xlu0 %v5460_v0  ;;  %5092 = vmatprep.subr.bf16.mxu0 %v5461_v1  ;;  %s6482_s1 = sld [smem:[#allocation12_spill]]  ;;  %v551_v12 = vld [vmem:[%s6438_s3] sm:$0xff]  ;;  %v552_v13 = vld [vmem:[%s6438_s3 + $0x8] sm:$0xff]  ;;  %vm475_vm1 = vcmask 1043456   ;;  %v449_v29 = vlaneseq }
  0x3c   : > { %s445_s27 = scalar_select %p444_p6, %s5562_s29, 1  ;;  %5110 = vmatprep.subr.bf16.mxu1 %v5461_v1  ;;  %4736 = vmatprep.mubr.msk.f32.mxu0 %vm5462_vm0, %v5463_v8  ;;  %v553_v14 = vld [vmem:[%s6438_s3 + $0x10] sm:$0xff]  ;;  %v554_v15 = vld [vmem:[%s6438_s3 + $0x18] sm:$0xff]  ;;  %v5111_v16 = vpack.c.bf16 %v552_v13, %v551_v12  ;;  %vm471_vm2 = vcmask 818176   ;;  %v633_v33 = vld [vmem:[%s6439_s4] sm:$0xff]  ;;  %vm559_vm4 = vcmask 261120  }
  0x3d   : > { %4747 = vmatprep.mubr.msk.f32.mxu1 %vm5462_vm0, %v5463_v8  ;;  %v5114_v20 = vpack.c.bf16 %v554_v15, %v553_v14  ;;  %v450_v30 = vand.u32 127, %v449_v29  ;;  %v634_v34 = vld [vmem:[%s6439_s4 + $0x8] sm:$0xff]  ;;  %v470_v35 = vld [vmem:[#allocation2] sm:$0xff]  ;;  %v636_v41 = vld [vmem:[%s6439_s4 + $0x18] sm:$0xff]  ;;  %v5740_v49 = vshrl.u32 %v449_v29, 7  ;;  %s6465_s21 = smov 120  }
  0x3e   : > { %s4414_s14 = sshll.u32 %s445_s27, 3  ;;  %5112 = vmatpush3.bf16.msra.mxu1 %v5111_v16  ;;  %v5117_v37 = vpack.c.bf16 %v634_v34, %v633_v33  ;;  %v635_v40 = vld [vmem:[%s6439_s4 + $0x10] sm:$0xff]  ;;  %v711_v43 = vld [vmem:[%s6440_s5] sm:$0xff]  ;;  %v712_v44 = vld [vmem:[%s6440_s5 + $0x8] sm:$0xff]  ;;  %vm813_vm5 = vcmask 64512   ;;  %s6463_s17 = smov 112  }
  0x3f   : > { %5113 = vmatprep.subr.bf16.mxu1 %v5461_v1  ;;  %v5120_v42 = vpack.c.bf16 %v636_v41, %v635_v40  ;;  %v5123_v45 = vpack.c.bf16 %v712_v44, %v711_v43  ;;  %v713_v46 = vld [vmem:[%s6440_s5 + $0x10] sm:$0xff]  ;;  %v714_v47 = vld [vmem:[%s6440_s5 + $0x18] sm:$0xff]  ;;  %v5743_v50 = vsub.s32 0, %v5740_v49  ;;  %v5748_v51 = vld [vmem:[%s6444_s9] sm:$0xff]  ;;  %v5753_v56 = vsub.s32 1, %v5740_v49  ;;  %s6461_s24 = smov 104  }
  0x40   : > { %s447_s23 = scalar_lea.vmem %s6481_s0, %s4414_s14  ;;  %v5126_v48 = vpack.c.bf16 %v714_v47, %v713_v46  ;;  %v5769_v63 = vsub.s32 2, %v5740_v49  ;;  %s6459_s16 = smov 8   ;;  %vm1463_vm6 = vcmask 130048   ;;  %vm1465_vm7 = vcmask 195584  }
  0x41   : > { %v448_v2 = vld [vmem:[%s447_s23] sm:$0xff]  ;;  %v458_v4 = vld [vmem:[%s6482_s1 + $0x8] sm:$0xff]  ;;  %v459_v6 = vld [vmem:[%s6482_s1 + $0x10] sm:$0xff]  ;;  %v558_v52 = vrot.slane %v5748_v51, %v5743_v50  ;;  %v640_v57 = vrot.slane %v5748_v51, %v5753_v56  ;;  %s6457_s27 = smov 16   ;;  %s6455_s14 = smov 24   ;;  %vm1670_vm8 = vcmask 523264  }
  0x42   : > { %v457_v3 = vld [vmem:[%s6482_s1] sm:$0xff]  ;;  %452 = vperm.xlu0 %5302, %v448_v2   ;;  %v460_v7 = vld [vmem:[%s6482_s1 + $0x18] sm:$0xff]  ;;  %v462_v11 = vld [vmem:[%s6482_s1 + $0x28] sm:$0xff]  ;;  %5115 = vmatpush3.bf16.msra.mxu1 %v5114_v20  ;;  %v718_v2 = vrot.slane %v5748_v51, %v5769_v63  ;;  %s6484_s15 = smov 8   ;;  %s6486_s20 = smov 24   ;;  %vm4326_vm9 = vcmask 8192  }
  0x43   : > { %v5093_v5 = vpack.c.bf16 %v458_v4, %v457_v3  ;;  %v5096_v9 = vpack.c.bf16 %v460_v7, %v459_v6  ;;  %v461_v10 = vld [vmem:[%s6482_s1 + $0x20] sm:$0xff]  ;;  %v463_v18 = vld [vmem:[%s6482_s1 + $0x30] sm:$0xff]  ;;  %v464_v19 = vld [vmem:[%s6482_s1 + $0x38] sm:$0xff]  ;;  %5116 = vmatprep.subr.bf16.mxu1 %v5461_v1  ;;  %s442_s23 = sand.u32 1, %s5449_s26   ;;  %s4538_s2 = sshll.u32 %s5562_s29, 4 }
  0x44   : > { %v5099_v17 = vpack.c.bf16 %v462_v11, %v461_v10  ;;  %v5102_v21 = vpack.c.bf16 %v464_v19, %v463_v18  ;;  %v465_v22 = vld [vmem:[%s6482_s1 + $0x40] sm:$0xff]  ;;  %v466_v23 = vld [vmem:[%s6482_s1 + $0x48] sm:$0xff]  ;;  %v467_v25 = vld [vmem:[%s6482_s1 + $0x50] sm:$0xff]  ;;  %s443_s30 = scalar_lea.vmem [#allocation5], %s442_s23  ;;  %p6489_p9 = scmp.ne.s32.totalorder %s6473_s18, 0 }
  0x45   : > { %5094 = vmatpush3.bf16.msra.mxu0 %v5093_v5  ;;  %v5105_v24 = vpack.c.bf16 %v466_v23, %v465_v22  ;;  %v468_v26 = vld [vmem:[%s6482_s1 + $0x58] sm:$0xff]  ;;  %v469_v28 = vld [vmem:[%s6482_s1 + $0x60] sm:$0xf]  ;;  %s4341_s1 = sshll.u32 %s443_s30, 4  ;;  %s5470_s29 = smov [#allocation5]   ;;  %s6395_s1 = int_to_ptr.vmem [resolvable:$true] %s4341_s1 }
  0x46   : > { %5095 = vmatprep.subr.bf16.mxu0 %v5461_v1  ;;  %v5108_v27 = vpack.c.bf16 %v468_v26, %v467_v25 }
  0x49   : > { %5097 = vmatpush3.bf16.msra.mxu0 %v5096_v9 }
  0x4a   : > { %5098 = vmatprep.subr.bf16.mxu0 %v5461_v1 }
  0x4d   : > { %5100 = vmatpush3.bf16.msra.mxu0 %v5099_v17 }
  0x4e   : > { %5101 = vmatprep.subr.bf16.mxu0 %v5461_v1 }
  0x51   : > { %5103 = vmatpush3.bf16.msra.mxu0 %v5102_v21 }
  0x52   : > { %5104 = vmatprep.subr.bf16.mxu0 %v5461_v1 }
  0x55   : > { %5106 = vmatpush3.bf16.msra.mxu0 %v5105_v24 }
  0x56   : > { %5107 = vmatprep.subr.bf16.mxu0 %v5461_v1 }
  0x59   : > { %5109 = vmatpush3.bf16.msra.mxu0 %v5108_v27 }
  0x5a   : > { %4734 = vmatprep.subr.mxu0 %v5463_v8 }
  0x5d   : > { %4735 = vmatpush3.msk.msra.mxu0 %vm475_vm1, %v469_v28 }
  0x5e   : > { %4772 = vmatprep.subr.mxu0 %v5463_v8 }
  0xc1   : > { %v453_v31 = vpop.permute.xlu0 %452 }
  0xc2   : > { %vm454_vm3 = vcmp.eq.s32.totalorder %v453_v31, %v450_v30 }
  0xc3   : > { %v4415_v32 = vsel %vm454_vm3, 1.0, %v5463_v8 }
  0xc4   : > { %4737 = vmatmul.mubr.msk.f32.vlgmr.msra.gmra.mrb[0].mxu0 %vm471_vm2, %v4415_v32 }
  0xc5   : > { %4774 = vmatprep.mubr.msk.f32.mxu0 %vm5462_vm0, %v5463_v8 }
 0x197   : > { %v545_v36 = vpop.f32.mrb[0].mxu0 }
 0x198   : > { %v5704_v38 = vadd.f32 %v545_v36, %v470_v35  ;;  %v4738_v39 = vpop.f32.mrb[1].mxu0 }
 0x19a   : > { %4748 = vmatmul.mubr.msk.f32.vlgmr.msra.gmra.mrb[0].mxu1 %vm559_vm4, %v5704_v38 }
 0x19b   : > { %5118 = vmatpush3.bf16.msra.mxu1 %v5117_v37  ;;  %4758 = vmatprep.mubr.msk.f32.mxu1 %vm5462_vm0, %v5463_v8 }
 0x19c   : > { %5119 = vmatprep.subr.bf16.mxu1 %v5461_v1 }
 0x19f   : > { %5121 = vmatpush3.bf16.msra.mxu1 %v5120_v42 }
 0x1a0   : > { %5122 = vmatprep.subr.bf16.mxu1 %v5461_v1 }
 0x1a2   : > { %4759 = vmatmul.mubr.msk.f32.vlgmr.msra.gmra.mrb[2].mxu1 %vm559_vm4, %v5704_v38 }
 0x1a3   : > { %5124 = vmatpush3.bf16.msra.mxu1 %v5123_v45  ;;  %4769 = vmatprep.mubr.msk.f32.mxu1 %vm5462_vm0, %v5463_v8 }
 0x1a4   : > { %5125 = vmatprep.subr.bf16.mxu1 %v5461_v1 }
 0x1a7   : > { %5127 = vmatpush3.bf16.msra.mxu1 %v5126_v48 }
 0x1a8   : > { %4782 = vmatprep.subr.mxu1 %v5463_v8 }
 0x1aa   : > { %4770 = vmatmul.mubr.msk.f32.vlgmr.msra.gmra.mrb[4].mxu1 %vm559_vm4, %v5704_v38 }
 0x1ab   : > { %4784 = vmatprep.mubr.msk.f32.mxu1 %vm5462_vm0, %v5463_v8 }
 0x26d   : > { %v629_v53 = vpop.f32.mrb[0].mxu1 }
 0x26e   : > { %v630_v54 = vadd.f32 %v629_v53, %v558_v52  ;;  %v4749_v55 = vpop.f32.mrb[1].mxu1 }
 0x270   : > { %790 = vrot.lane.b32.xlu1 %v630_v54, %s6465_s21 }
 0x275   : > { %v707_v58 = vpop.f32.mrb[2].mxu1 }
 0x276   : > { %v708_v59 = vadd.f32 %v707_v58, %v640_v57  ;;  %v4760_v60 = vpop.f32.mrb[3].mxu1 }
 0x278   : > { %799 = vrot.lane.b32.xlu1 %v708_v59, %s6463_s17  ;;  %797 = vrot.lane.b32.xlu0 %v708_v59, %s6465_s21 }
 0x279   : > { %4773 = vmatpush3.xpose.msk.msra.mxu0 %vm813_vm5, %v708_v59 }
 0x27a   : > { %4777 = vmatprep.subr.mxu0 %v5463_v8 }
 0x27c   : > { %4775 = vmatmul.mubr.msk.f32.vlgmr.msra.gmra.mrb[2].mxu0 %vm813_vm5, %v630_v54  ;;  %792 = vrot.lane.b32.xlu1 %v630_v54, %s6463_s17 }
 0x27d   : > { %801 = vrot.lane.b32.xlu0 %v708_v59, %s6461_s24  ;;  %v785_v61 = vpop.f32.mrb[4].mxu1  ;;  %4779 = vmatprep.mubr.msk.f32.mxu0 %vm5462_vm0, %v5463_v8 }
 0x27e   : > { %v4771_v62 = vpop.f32.mrb[5].mxu1  ;;  %v5777_v5 = vadd.f32 %v785_v61, %v718_v2 }
 0x281   : > { %794 = vrot.lane.b32.xlu0 %v630_v54, %s6461_s24 }
 0x2e2   : > { %v791_v0 = vpop.permute.xlu1 %790 }
 0x2ea   : > { %v800_v3 = vpop.permute.xlu1 %799  ;;  %v798_v4 = vpop.permute.xlu0 %797 }
 0x2eb   : > { %4778 = vmatpush3.xpose.msk.msra.mxu0 %vm813_vm5, %v798_v4  ;;  %4783 = vmatpush3.xpose.msk.msra.mxu1 %vm813_vm5, %v800_v3 }
 0x2ec   : > { %4792 = vmatprep.subr.mxu1 %v5463_v8  ;;  %4787 = vmatprep.subr.mxu0 %v5463_v8 }
 0x2ee   : > { %v793_v6 = vpop.permute.xlu1 %792  ;;  %4780 = vmatmul.mubr.msk.f32.vlgmr.msra.gmra.mrb[4].mxu0 %vm813_vm5, %v791_v0 }
 0x2ef   : > { %v802_v7 = vpop.permute.xlu0 %801  ;;  %4785 = vmatmul.mubr.msk.f32.vlgmr.msra.gmra.mrb[6].mxu1 %vm813_vm5, %v793_v6  ;;  %4789 = vmatprep.mubr.msk.f32.mxu0 %vm5462_vm0, %v5463_v8  ;;  %v1467_v6 = vld [vmem:[%s6441_s6] sm:$0xff] }
 0x2f0   : > { %4788 = vmatpush3.xpose.msk.msra.mxu0 %vm813_vm5, %v802_v7  ;;  %4793 = vmatpush3.msra.mxu1 %v5777_v5  ;;  %v1468_v7 = vld [vmem:[%s6441_s6 + $0x8] sm:$0xff] }
 0x2f1   : > { %4794 = vmatprep.mubr.msk.f32.mxu1 %vm5462_vm0, %v5463_v8  ;;  %4802 = vmatprep.subr.mxu1 %v5463_v8 }
 0x2f2   : > { %4797 = vmatprep.subr.mxu0 %v5463_v8 }
 0x2f3   : > { %v795_v9 = vpop.permute.xlu0 %794 }
 0x2f4   : > { %4790 = vmatmul.mubr.msk.f32.vlgmr.msra.gmra.mrb[6].mxu0 %vm813_vm5, %v795_v9  ;;  %v1469_v9 = vld [vmem:[%s6441_s6 + $0x10] sm:$0xff] }
 0x2f5   : > { %4799 = vmatprep.mubr.msk.f32.mxu0 %vm5462_vm0, %v5463_v8 }
 0x34f   : > { %v884_v10 = vpop.f32.mrb[2].mxu0 }
 0x350   : > { %v1110_v11 = vmul.f32 0.35355338, %v884_v10  ;;  %v4776_v12 = vpop.f32.mrb[3].mxu0  ;;  %v5129_v10 = vpack.c.bf16 %v1468_v7, %v1467_v6  ;;  %v1665_v6 = vld [vmem:[%s6443_s8 + $0x38] sm:$0xff] }
 0x352   : > { %v1114_v13 = vsel %vm813_vm5, %v1110_v11, -inf }
 0x353   : > { %1115 = vmax.xlane.f32.xlu1 %v1114_v13 }
 0x3c1   : > { %v958_v14 = vpop.f32.mrb[4].mxu0 }
 0x3c2   : > { %v1111_v15 = vmul.f32 0.35355338, %v958_v14  ;;  %v4781_v16 = vpop.f32.mrb[5].mxu0  ;;  %v1032_v17 = vpop.f32.mrb[6].mxu1 }
 0x3c3   : > { %v4786_v18 = vpop.f32.mrb[7].mxu1  ;;  %v1112_v19 = vmul.f32 0.35355338, %v1032_v17 }
 0x3c4   : > { %v1117_v20 = vsel %vm813_vm5, %v1111_v15, -inf }
 0x3c5   : > { %1118 = vmax.xlane.f32.xlu0 %v1117_v20  ;;  %v1120_v24 = vsel %vm813_vm5, %v1112_v19, -inf }
 0x3c7   : > { %v1106_v21 = vpop.f32.mrb[6].mxu0 }
 0x3c8   : > { %v1113_v22 = vmul.f32 0.35355338, %v1106_v21  ;;  %v4791_v23 = vpop.f32.mrb[7].mxu0 }
 0x3c9   : > { %1121 = vmax.xlane.f32.xlu0 %v1120_v24 }
 0x3ca   : > { %v1123_v25 = vsel %vm813_vm5, %v1113_v22, -inf }
 0x3cb   : > { %1124 = vmax.xlane.f32.xlu1 %v1123_v25  ;;  %v5845_v25 = vsub.s32 3, %v5740_v49 }
 0x3e0   : > { %v1116_v26 = vpop.xlane.xlu1 %1115 }
 0x3e1   : > { %v1126_v27 = vsub.f32 %v1110_v11, %v1116_v26  ;;  %v1470_v11 = vld [vmem:[%s6441_s6 + $0x18] sm:$0xff]  ;;  %v1474_v26 = vrot.slane %v5748_v51, %v5845_v25 }
 0x3e2   : > { %v5132_v12 = vpack.c.bf16 %v1470_v11, %v1469_v9  ;;  %v4434_v9 = vld [vmem:[%s6445_s10] ss:$0 sm:$0xff] }
 0x3e3   : > { %v1130_v28 = vmul.f32 1.442695, %v1126_v27 }
 0x3e5   : > { %5303 = vpow2.f32 %v1130_v28 }
 0x3ef   : > { %v5304_v29 = vpop.eup %5303 }
 0x3f0   : > { %v1138_v30 = vsel %vm813_vm5, %v5304_v29, 0.0 }
 0x3f1   : > { %1139 = vadd.xlane.f32.xlu0 %v1138_v30 }
 0x452   : > { %v1119_v31 = vpop.xlane.xlu0 %1118 }
 0x453   : > { %v1127_v32 = vsub.f32 %v1111_v15, %v1119_v31 }
 0x455   : > { %v1132_v33 = vmul.f32 1.442695, %v1127_v32 }
 0x456   : > { %v1122_v34 = vpop.xlane.xlu0 %1121 }
 0x457   : > { %5305 = vpow2.f32 %v1132_v33  ;;  %v1128_v35 = vsub.f32 %v1112_v19, %v1122_v34 }
 0x458   : > { %v1125_v43 = vpop.xlane.xlu1 %1124 }
 0x459   : > { %v1134_v36 = vmul.f32 1.442695, %v1128_v35  ;;  %v1129_v44 = vsub.f32 %v1113_v22, %v1125_v43  ;;  %v1658_v43 = vld [vmem:[%s6443_s8] sm:$0xff] }
 0x45b   : > { %5307 = vpow2.f32 %v1134_v36  ;;  %v1136_v45 = vmul.f32 1.442695, %v1129_v44  ;;  %v1659_v44 = vld [vmem:[%s6443_s8 + $0x8] sm:$0xff] }
 0x461   : > { %v5306_v37 = vpop.eup %5305 }
 0x462   : > { %v1141_v39 = vsel %vm813_vm5, %v5306_v37, 0.0 }
 0x463   : > { %1142 = vadd.xlane.f32.xlu1 %v1141_v39  ;;  %v1574_v39 = vld [vmem:[%s6442_s7 + $0x8] sm:$0xff] }
 0x465   : > { %v5308_v40 = vpop.eup %5307 }
 0x466   : > { %v1144_v41 = vsel %vm813_vm5, %v5308_v40, 0.0 }
 0x467   : > { %1145 = vadd.xlane.f32.xlu0 %v1144_v41  ;;  %v1576_v41 = vld [vmem:[%s6442_s7 + $0x18] sm:$0xff] }
 0x474   : > { %807 = vrot.lane.b32.xlu1 %v5777_v5, %s6463_s17 }
 0x47d   : > { %804 = vrot.lane.b32.xlu0 %v5777_v5, %s6465_s21 }
 0x47e   : > { %v1140_v42 = vpop.xlane.xlu0 %1139 }
 0x47f   : > { %5309 = vrcp.f32 %v1140_v42 }
 0x480   : > { %5311 = vpow2.f32 %v1136_v45  ;;  %v1660_v45 = vld [vmem:[%s6443_s8 + $0x10] sm:$0xff] }
 0x489   : > { %v5310_v46 = vpop.eup %5309 }
 0x48a   : > { %v1154_v47 = vmul.f32 %v5310_v46, %v5304_v29  ;;  %v5312_v48 = vpop.eup %5311  ;;  %v5141_v46 = vpack.c.bf16 %v1659_v44, %v1658_v43  ;;  %v550_v43 = vld [vmem:[%s6444_s9 + $0x8] sm:$0x7] }
 0x48b   : > { %v1147_v52 = vsel %vm813_vm5, %v5312_v48, 0.0 }
 0x48c   : > { %4795 = vmatmul.mubr.msk.f32.vlgmr.msra.gmra.mrb[8].mxu1 %vm813_vm5, %v1154_v47  ;;  %v1661_v47 = vld [vmem:[%s6443_s8 + $0x18] sm:$0xff] }
 0x48d   : > { %4804 = vmatprep.mubr.msk.f32.mxu1 %vm5462_vm0, %v5463_v8 }
 0x498   : > { %1148 = vadd.xlane.f32.xlu1 %v1147_v52  ;;  %v1662_v52 = vld [vmem:[%s6443_s8 + $0x20] sm:$0xff] }
 0x4a9   : > { %810 = vrot.lane.b32.xlu1 %v5777_v5, %s6461_s24  ;;  %s4329_s24 = scalar_lea.sflag [#allocation4], %s442_s23 }
 0x4f0   : > { %v1143_v53 = vpop.xlane.xlu1 %1142 }
 0x4f1   : > { %5313 = vrcp.f32 %v1143_v53  ;;  %v1663_v53 = vld [vmem:[%s6443_s8 + $0x28] sm:$0xff] }
 0x4f4   : > { %v1146_v54 = vpop.xlane.xlu0 %1145  ;;  %v808_v55 = vpop.permute.xlu1 %807 }
 0x4f5   : > { %5315 = vrcp.f32 %v1146_v54  ;;  %4803 = vmatpush3.msra.mxu1 %v808_v55  ;;  %v5147_v54 = vpack.c.bf16 %v1663_v53, %v1662_v52  ;;  %v1771_v52 = vrot.slane %v550_v43, %v5753_v56 }
 0x4f6   : > { %5128 = vmatprep.subr.bf16.mxu1 %v5461_v1 }
 0x4f8   : > { %v805_v57 = vpop.permute.xlu0 %804 }
 0x4f9   : > { %4798 = vmatpush3.msra.mxu0 %v805_v57 }
 0x4fa   : > { %4807 = vmatprep.subr.mxu0 %v5463_v8 }
 0x4fb   : > { %v5314_v58 = vpop.eup %5313 }
 0x4fc   : > { %v1155_v59 = vmul.f32 %v5314_v58, %v5306_v37  ;;  %v1573_v37 = vld [vmem:[%s6442_s7] sm:$0xff] }
 0x4fe   : > { %4800 = vmatmul.mubr.msk.f32.vlgmr.msra.gmra.mrb[8].mxu0 %vm813_vm5, %v1155_v59  ;;  %v5888_v59 = vsub.s32 5, %v5740_v49 }
 0x4ff   : > { %v5316_v60 = vpop.eup %5315  ;;  %4809 = vmatprep.mubr.msk.f32.mxu0 %vm5462_vm0, %v5463_v8 }
 0x500   : > { %v1156_v61 = vmul.f32 %v5316_v60, %v5308_v40  ;;  %v5135_v40 = vpack.c.bf16 %v1574_v39, %v1573_v37  ;;  %v5891_v60 = vsub.s32 6, %v5740_v49  ;;  %v4452_v37 = vld [vmem:[%s6440_s5 + $0x38] sm:$0xff] }
 0x502   : > { %4805 = vmatmul.mubr.msk.f32.vlgmr.msra.gmra.mrb[10].mxu1 %vm813_vm5, %v1156_v61  ;;  %v1566_v61 = vrot.slane %v5748_v51, %v5888_v59 }
 0x503   : > { %4820 = vmatprep.mubr.msk.f32.mxu1 %vm5462_vm0, %v5463_v8  ;;  %5130 = vmatpush3.bf16.msra.mxu1 %v5129_v10 }
 0x504   : > { %5131 = vmatprep.subr.bf16.mxu1 %v5461_v1 }
 0x507   : > { %5133 = vmatpush3.bf16.msra.mxu1 %v5132_v12 }
 0x508   : > { %5140 = vmatprep.subr.bf16.mxu1 %v5461_v1 }
 0x525   : > { %v1149_v62 = vpop.xlane.xlu1 %1148 }
 0x526   : > { %5317 = vrcp.f32 %v1149_v62 }
 0x529   : > { %v811_v0 = vpop.permute.xlu1 %810 }
 0x52a   : > { %4808 = vmatpush3.msra.mxu0 %v811_v0 }
 0x52b   : > { %5134 = vmatprep.subr.bf16.mxu0 %v5461_v1 }
 0x530   : > { %v5318_v2 = vpop.eup %5317 }
 0x531   : > { %v1157_v3 = vmul.f32 %v5318_v2, %v5312_v48  ;;  %v5144_v48 = vpack.c.bf16 %v1661_v47, %v1660_v45  ;;  %v1571_v2 = vrot.slane %v5748_v51, %v5891_v60  ;;  %v1766_v47 = vrot.slane %v550_v43, %v5743_v50 }
 0x533   : > { %4810 = vmatmul.mubr.msk.f32.vlgmr.msra.gmra.mrb[10].mxu0 %vm813_vm5, %v1157_v3 }
 0x534   : > { %4831 = vmatprep.mubr.msk.f32.mxu0 %vm5462_vm0, %v5463_v8  ;;  %5136 = vmatpush3.bf16.msra.mxu0 %v5135_v40 }
 0x535   : > { %5137 = vmatprep.subr.bf16.mxu0 %v5461_v1 }
 0x55f   : > { %v1227_v4 = vpop.f32.mrb[8].mxu1 }
 0x560   : > { %v4796_v5 = vpop.f32.mrb[9].mxu1 }
 0x561   : > { %v1664_v5 = vld [vmem:[%s6443_s8 + $0x30] sm:$0xff] }
 0x562   : > { %v5150_v7 = vpack.c.bf16 %v1665_v6, %v1664_v5 }
 0x5d1   : > { %v1300_v13 = vpop.f32.mrb[8].mxu0 }
 0x5d2   : > { %1451 = vrot.lane.b32.xlu0 %v1300_v13, %s6459_s16  ;;  %v4801_v14 = vpop.f32.mrb[9].mxu0 }
 0x5d3   : > { %v5914_v14 = vsub.s32 4, %v5740_v49 }
 0x5d5   : > { %v1373_v15 = vpop.f32.mrb[10].mxu1 }
 0x5d6   : > { %1455 = vrot.lane.b32.xlu1 %v1373_v15, %s6457_s27  ;;  %v4806_v16 = vpop.f32.mrb[11].mxu1  ;;  %v1669_v15 = vrot.slane %v5748_v51, %v5914_v14  ;;  %s6483_s27 = smov 104  }
 0x606   : > { %v1446_v17 = vpop.f32.mrb[10].mxu0 }
 0x607   : > { %1459 = vrot.lane.b32.xlu0 %v1446_v17, %s6455_s14  ;;  %v4811_v18 = vpop.f32.mrb[11].mxu0  ;;  %s6485_s14 = smov 16  }
 0x644   : > { %v1452_v19 = vpop.permute.xlu0 %1451 }
 0x645   : > { %v1462_v21 = vsel %vm813_vm5, %v1227_v4, %v1452_v19 }
 0x648   : > { %v1456_v20 = vpop.permute.xlu1 %1455 }
 0x649   : > { %v1464_v22 = vsel %vm1463_vm6, %v1462_v21, %v1456_v20 }
 0x679   : > { %v1460_v23 = vpop.permute.xlu0 %1459 }
 0x67a   : > { %v1466_v24 = vsel %vm1465_vm7, %v1464_v22, %v1460_v23 }
 0x67b   : > { %4821 = vmatmul.mubr.msk.f32.vlgmr.msra.gmra.mrb[12].mxu1 %vm559_vm4, %v1466_v24 }
 0x67c   : > { %4850 = vmatprep.mubr.msk.f32.mxu1 %vm5462_vm0, %v5463_v8  ;;  %5142 = vmatpush3.bf16.msra.mxu1 %v5141_v46 }
 0x67d   : > { %5143 = vmatprep.subr.bf16.mxu1 %v5461_v1 }
 0x680   : > { %5145 = vmatpush3.bf16.msra.mxu1 %v5144_v48 }
 0x681   : > { %5146 = vmatprep.subr.bf16.mxu1 %v5461_v1 }
 0x684   : > { %5148 = vmatpush3.bf16.msra.mxu1 %v5147_v54  ;;  %v1776_v54 = vrot.slane %v550_v43, %v5769_v63 }
 0x685   : > { %5149 = vmatprep.subr.bf16.mxu1 %v5461_v1 }
 0x688   : > { %5151 = vmatpush3.bf16.msra.mxu1 %v5150_v7 }
 0x689   : > { %5164 = vmatprep.subr.bf16.mxu1 %v5461_v1 }
 0x74e   : > { %v1544_v27 = vpop.f32.mrb[12].mxu1 }
 0x74f   : > { %v1545_v28 = vadd.f32 %v1544_v27, %v1474_v26  ;;  %v4822_v29 = vpop.f32.mrb[13].mxu1  ;;  %v4439_v27 = vld [vmem:[%s6438_s3 + $0x20] sm:$0xff] }
 0x751   : > { %v1548_v30 = vadd.f32 %v1545_v28, %v5704_v38  ;;  %v1575_v38 = vld [vmem:[%s6442_s7 + $0x10] sm:$0xff]  ;;  %v4440_v28 = vld [vmem:[%s6438_s3 + $0x28] sm:$0xff] }
 0x752   : > { %v5138_v42 = vpack.c.bf16 %v1576_v41, %v1575_v38  ;;  %v5153_v29 = vpack.c.bf16 %v4440_v28, %v4439_v27 }
 0x753   : > { %v1549_v31 = vsel %vm559_vm4, %v1548_v30, 0.0 }
 0x754   : > { %1550 = vadd.xlane.f32.xlu1 %v1549_v31  ;;  %5139 = vmatpush3.bf16.msra.mxu0 %v5138_v42  ;;  %v4450_v31 = vld [vmem:[%s6440_s5 + $0x28] sm:$0xff]  ;;  %v5949_v42 = vsub.s32 7, %v5740_v49  ;;  %v4444_v49 = vld [vmem:[%s6439_s4 + $0x20] sm:$0xff] }
 0x755   : > { %5152 = vmatprep.subr.bf16.mxu0 %v5461_v1 }
 0x756   : > { %v1761_v44 = vrot.slane %v5748_v51, %v5949_v42 }
 0x7e1   : > { %v1551_v32 = vpop.xlane.xlu1 %1550 }
 0x7e2   : > { %v1553_v33 = vmul.f32 0.03125, %v1551_v32 }
 0x7e4   : > { %v1554_v34 = vsub.f32 %v1548_v30, %v1553_v33  ;;  %v4449_v30 = vld [vmem:[%s6440_s5 + $0x20] sm:$0xff]  ;;  %v4441_v33 = vld [vmem:[%s6438_s3 + $0x30] sm:$0xff] }
 0x7e5   : > { %v5165_v32 = vpack.c.bf16 %v4450_v31, %v4449_v30 }
 0x7e6   : > { %v1555_v35 = vmul.f32 %v1554_v34, %v1554_v34 }
 0x7e8   : > { %v1556_v36 = vsel %vm559_vm4, %v1555_v35, 0.0  ;;  %v4451_v35 = vld [vmem:[%s6440_s5 + $0x30] sm:$0xff] }
 0x7e9   : > { %1557 = vadd.xlane.f32.xlu0 %v1556_v36  ;;  %v5168_v39 = vpack.c.bf16 %v4452_v37, %v4451_v35 }
 0x876   : > { %v1558_v55 = vpop.xlane.xlu0 %1557 }
 0x877   : > { %v1559_v57 = vmul.f32 0.03125, %v1558_v55  ;;  %v4445_v55 = vld [vmem:[%s6439_s4 + $0x28] sm:$0xff] }
 0x878   : > { %v5159_v51 = vpack.c.bf16 %v4445_v55, %v4444_v49 }
 0x879   : > { %v1560_v58 = vadd.f32 1e-05, %v1559_v57 }
 0x87b   : > { %5319 = vrsqrt.f32 %v1560_v58 }
 0x885   : > { %v5320_v62 = vpop.eup %5319 }
 0x886   : > { %v1562_v0 = vmul.f32 %v5320_v62, %v1554_v34  ;;  %v4442_v34 = vld [vmem:[%s6438_s3 + $0x38] sm:$0xff] }
 0x887   : > { %v5156_v36 = vpack.c.bf16 %v4442_v34, %v4441_v33  ;;  %v4447_v62 = vld [vmem:[%s6439_s4 + $0x38] sm:$0xff] }
 0x888   : > { %v1567_v3 = vmul.f32 %v1566_v61, %v1562_v0  ;;  %v4446_v61 = vld [vmem:[%s6439_s4 + $0x30] sm:$0xff] }
 0x889   : > { %v5162_v0 = vpack.c.bf16 %v4447_v62, %v4446_v61 }
 0x88a   : > { %v1572_v4 = vadd.f32 %v1571_v2, %v1567_v3  ;;  %v5990_v2 = vld [vmem:[%s6444_s9 + $0x10] sm:$0xff] }
 0x88b   : > { %v1789_v3 = vrot.slane %v5990_v2, %v5743_v50 }
 0x88c   : > { %4832 = vmatmul.mubr.msk.f32.vlgmr.msra.gmra.mrb[12].mxu0 %vm559_vm4, %v1572_v4 }
 0x88d   : > { %4861 = vmatprep.mubr.msk.f32.mxu0 %vm5462_vm0, %v5463_v8  ;;  %5154 = vmatpush3.bf16.msra.mxu0 %v5153_v29 }
 0x88e   : > { %5155 = vmatprep.subr.bf16.mxu0 %v5461_v1 }
 0x891   : > { %5157 = vmatpush3.bf16.msra.mxu0 %v5156_v36 }
 0x892   : > { %5158 = vmatprep.subr.bf16.mxu0 %v5461_v1 }
 0x95f   : > { %v1653_v10 = vpop.f32.mrb[12].mxu0 }
 0x960   : > { %v1654_v11 = vadd.f32 %v4434_v9, %v1653_v10  ;;  %v4833_v12 = vpop.f32.mrb[13].mxu0  ;;  %v1871_v10 = vrot.slane %v5990_v2, %v5753_v56 }
 0x962   : > { %v1657_v13 = vmax.f32 %v1654_v11, 0.0 }
 0x964   : > { %4851 = vmatmul.mubr.msk.f32.vlgmr.msra.gmra.mrb[14].mxu1 %vm1670_vm8, %v1657_v13 }
 0x965   : > { %4883 = vmatprep.mubr.msk.f32.mxu1 %vm5462_vm0, %v5463_v8  ;;  %5166 = vmatpush3.bf16.msra.mxu1 %v5165_v32 }
 0x966   : > { %5167 = vmatprep.subr.bf16.mxu1 %v5461_v1 }
 0x969   : > { %5169 = vmatpush3.bf16.msra.mxu1 %v5168_v39 }
 0x96a   : > { %4896 = vmatprep.subr.mxu1 %v5463_v8 }
 0xa37   : > { %v1740_v16 = vpop.f32.mrb[14].mxu1 }
 0xa38   : > { %v1741_v17 = vadd.f32 %v1740_v16, %v1669_v15  ;;  %v4852_v18 = vpop.f32.mrb[15].mxu1  ;;  %v1950_v16 = vrot.slane %v5990_v2, %v5769_v63 }
 0xa3a   : > { %v1744_v19 = vadd.f32 %v1741_v17, %v1572_v4 }
 0xa3c   : > { %v1745_v20 = vsel %vm559_vm4, %v1744_v19, 0.0 }
 0xa3d   : > { %1746 = vadd.xlane.f32.xlu0 %v1745_v20 }
 0xaca   : > { %v1747_v21 = vpop.xlane.xlu0 %1746 }
 0xacb   : > { %v1748_v22 = vmul.f32 0.03125, %v1747_v21 }
 0xacd   : > { %v1749_v23 = vsub.f32 %v1744_v19, %v1748_v22 }
 0xacf   : > { %v1750_v24 = vmul.f32 %v1749_v23, %v1749_v23 }
 0xad1   : > { %v1751_v26 = vsel %vm559_vm4, %v1750_v24, 0.0 }
 0xad2   : > { %1752 = vadd.xlane.f32.xlu1 %v1751_v26 }
 0xb5f   : > { %v1753_v40 = vpop.xlane.xlu1 %1752 }
 0xb60   : > { %v1754_v38 = vmul.f32 0.03125, %v1753_v40 }
 0xb62   : > { %v1755_v41 = vadd.f32 1e-05, %v1754_v38 }
 0xb64   : > { %5321 = vrsqrt.f32 %v1755_v41 }
 0xb6e   : > { %v5322_v45 = vpop.eup %5321 }
 0xb6f   : > { %v1757_v46 = vmul.f32 %v5322_v45, %v1749_v23 }
 0xb71   : > { %v1762_v48 = vmul.f32 %v1761_v44, %v1757_v46 }
 0xb73   : > { %v1767_v53 = vadd.f32 %v1766_v47, %v1762_v48 }
 0xb75   : > { %v1772_v57 = vmul.f32 %v1771_v52, %v1767_v53 }
 0xb77   : > { %v5965_v58 = vadd.f32 %v1776_v54, %v1772_v57 }
 0xb79   : > { %4862 = vmatmul.mubr.msk.f32.vlgmr.msra.gmra.mrb[14].mxu0 %vm559_vm4, %v5965_v58  ;;  %4884 = vmatmul.mubr.msk.f32.vlgmr.msra.gmra.mrb[16].mxu1 %vm559_vm4, %v5965_v58 }
 0xb7a   : > { %5160 = vmatpush3.bf16.msra.mxu0 %v5159_v51  ;;  %4872 = vmatprep.mubr.msk.f32.mxu0 %vm5462_vm0, %v5463_v8 }
 0xb7b   : > { %5161 = vmatprep.subr.bf16.mxu0 %v5461_v1  ;;  %4898 = vmatprep.mubr.msk.f32.mxu1 %vm5462_vm0, %v5463_v8 }
 0xb7e   : > { %5163 = vmatpush3.bf16.msra.mxu0 %v5162_v0 }
 0xb7f   : > { %4886 = vmatprep.subr.mxu0 %v5463_v8 }
 0xb81   : > { %4873 = vmatmul.mubr.msk.f32.vlgmr.msra.gmra.mrb[16].mxu0 %vm559_vm4, %v5965_v58 }
 0xb82   : > { %4888 = vmatprep.mubr.msk.f32.mxu0 %vm5462_vm0, %v5463_v8 }
 0xc4c   : > { %v1859_v4 = vpop.f32.mrb[14].mxu0  ;;  %v2017_v5 = vpop.f32.mrb[16].mxu1 }
 0xc4d   : > { %v1860_v6 = vadd.f32 %v1859_v4, %v1789_v3  ;;  %v4863_v7 = vpop.f32.mrb[15].mxu0  ;;  %v4885_v9 = vpop.f32.mrb[17].mxu1  ;;  %v6013_v19 = vadd.f32 %v2017_v5, %v1950_v16 }
 0xc4f   : > { %2022 = vrot.lane.b32.xlu1 %v1860_v6, %s6465_s21 }
 0xc54   : > { %v1938_v11 = vpop.f32.mrb[16].mxu0 }
 0xc55   : > { %v1939_v12 = vadd.f32 %v1938_v11, %v1871_v10  ;;  %v4874_v13 = vpop.f32.mrb[17].mxu0 }
 0xc57   : > { %2031 = vrot.lane.b32.xlu1 %v1939_v12, %s6463_s17  ;;  %2029 = vrot.lane.b32.xlu0 %v1939_v12, %s6465_s21 }
 0xc58   : > { %4887 = vmatpush3.xpose.msk.msra.mxu0 %vm813_vm5, %v1939_v12 }
 0xc59   : > { %4891 = vmatprep.subr.mxu0 %v5463_v8 }
 0xc5b   : > { %4889 = vmatmul.mubr.msk.f32.vlgmr.msra.gmra.mrb[18].mxu0 %vm813_vm5, %v1860_v6  ;;  %2024 = vrot.lane.b32.xlu1 %v1860_v6, %s6463_s17 }
 0xc5c   : > { %2033 = vrot.lane.b32.xlu0 %v1939_v12, %s6483_s27  ;;  %4893 = vmatprep.mubr.msk.f32.mxu0 %vm5462_vm0, %v5463_v8 }
 0xc60   : > { %2026 = vrot.lane.b32.xlu0 %v1860_v6, %s6483_s27 }
 0xcc1   : > { %v2023_v15 = vpop.permute.xlu1 %2022 }
 0xcc9   : > { %v2032_v17 = vpop.permute.xlu1 %2031  ;;  %v2030_v18 = vpop.permute.xlu0 %2029 }
 0xcca   : > { %4892 = vmatpush3.xpose.msk.msra.mxu0 %vm813_vm5, %v2030_v18  ;;  %4897 = vmatpush3.xpose.msk.msra.mxu1 %vm813_vm5, %v2032_v17 }
 0xccb   : > { %4906 = vmatprep.subr.mxu1 %v5463_v8  ;;  %4901 = vmatprep.subr.mxu0 %v5463_v8 }
 0xccd   : > { %v2025_v20 = vpop.permute.xlu1 %2024  ;;  %4894 = vmatmul.mubr.msk.f32.vlgmr.msra.gmra.mrb[20].mxu0 %vm813_vm5, %v2023_v15 }
 0xcce   : > { %v2034_v21 = vpop.permute.xlu0 %2033  ;;  %4899 = vmatmul.mubr.msk.f32.vlgmr.msra.gmra.mrb[18].mxu1 %vm813_vm5, %v2025_v20  ;;  %4903 = vmatprep.mubr.msk.f32.mxu0 %vm5462_vm0, %v5463_v8 }
 0xccf   : > { %4902 = vmatpush3.xpose.msk.msra.mxu0 %vm813_vm5, %v2034_v21  ;;  %4907 = vmatpush3.msra.mxu1 %v6013_v19 }
 0xcd0   : > { %4908 = vmatprep.mubr.msk.f32.mxu1 %vm5462_vm0, %v5463_v8  ;;  %4916 = vmatprep.subr.mxu1 %v5463_v8 }
 0xcd1   : > { %4911 = vmatprep.subr.mxu0 %v5463_v8 }
 0xcd2   : > { %v2027_v22 = vpop.permute.xlu0 %2026 }
 0xcd3   : > { %4904 = vmatmul.mubr.msk.f32.vlgmr.msra.gmra.mrb[22].mxu0 %vm813_vm5, %v2027_v22 }
 0xcd4   : > { %4913 = vmatprep.mubr.msk.f32.mxu0 %vm5462_vm0, %v5463_v8 }
 0xd2e   : > { %v2115_v23 = vpop.f32.mrb[18].mxu0 }
 0xd2f   : > { %v2341_v24 = vmul.f32 0.35355338, %v2115_v23  ;;  %v4890_v26 = vpop.f32.mrb[19].mxu0 }
 0xd30   : > { %v4467_v26 = vld [vmem:[%s6441_s6 + $0x28] sm:$0xff] }
 0xd31   : > { %v2345_v27 = vsel %vm813_vm5, %v2341_v24, -inf }
 0xd32   : > { %2346 = vmax.xlane.f32.xlu1 %v2345_v27  ;;  %v4468_v27 = vld [vmem:[%s6441_s6 + $0x30] sm:$0xff] }
 0xda0   : > { %v2189_v28 = vpop.f32.mrb[20].mxu0 }
 0xda1   : > { %v2342_v29 = vmul.f32 0.35355338, %v2189_v28  ;;  %v4895_v30 = vpop.f32.mrb[21].mxu0  ;;  %v2263_v31 = vpop.f32.mrb[18].mxu1 }
 0xda2   : > { %v4900_v32 = vpop.f32.mrb[19].mxu1  ;;  %v2343_v33 = vmul.f32 0.35355338, %v2263_v31 }
 0xda3   : > { %v2348_v34 = vsel %vm813_vm5, %v2342_v29, -inf }
 0xda4   : > { %2349 = vmax.xlane.f32.xlu0 %v2348_v34  ;;  %v2351_v39 = vsel %vm813_vm5, %v2343_v33, -inf }
 0xda6   : > { %v2337_v35 = vpop.f32.mrb[22].mxu0 }
 0xda7   : > { %v2344_v36 = vmul.f32 0.35355338, %v2337_v35  ;;  %v4905_v37 = vpop.f32.mrb[23].mxu0 }
 0xda8   : > { %2352 = vmax.xlane.f32.xlu0 %v2351_v39 }
 0xda9   : > { %v2354_v40 = vsel %vm813_vm5, %v2344_v36, -inf }
 0xdaa   : > { %2355 = vmax.xlane.f32.xlu1 %v2354_v40 }
 0xdbf   : > { %v2347_v38 = vpop.xlane.xlu1 %2346 }
 0xdc0   : > { %v2357_v41 = vsub.f32 %v2341_v24, %v2347_v38  ;;  %v4466_v24 = vld [vmem:[%s6441_s6 + $0x20] sm:$0xff] }
 0xdc1   : > { %v5171_v28 = vpack.c.bf16 %v4467_v26, %v4466_v24  ;;  %v4484_v24 = vld [vmem:[%s6443_s8 + $0x70] sm:$0xff]  ;;  %v4485_v26 = vld [vmem:[%s6443_s8 + $0x78] sm:$0xff] }
 0xdc2   : > { %v2361_v43 = vmul.f32 1.442695, %v2357_v41 }
 0xdc4   : > { %5323 = vpow2.f32 %v2361_v43 }
 0xdce   : > { %v5324_v44 = vpop.eup %5323 }
 0xdcf   : > { %v2369_v45 = vsel %vm813_vm5, %v5324_v44, 0.0 }
 0xdd0   : > { %2370 = vadd.xlane.f32.xlu0 %v2369_v45 }
 0xe31   : > { %v2350_v46 = vpop.xlane.xlu0 %2349 }
 0xe32   : > { %v2358_v47 = vsub.f32 %v2342_v29, %v2350_v46  ;;  %v4469_v29 = vld [vmem:[%s6441_s6 + $0x38] sm:$0xff] }
 0xe33   : > { %v5174_v30 = vpack.c.bf16 %v4469_v29, %v4468_v27  ;;  %v5192_v27 = vpack.c.bf16 %v4485_v26, %v4484_v24 }
 0xe34   : > { %v2363_v48 = vmul.f32 1.442695, %v2358_v47 }
 0xe35   : > { %v2353_v52 = vpop.xlane.xlu0 %2352 }
 0xe36   : > { %5325 = vpow2.f32 %v2363_v48  ;;  %v2359_v53 = vsub.f32 %v2343_v33, %v2353_v52 }
 0xe37   : > { %v2356_v62 = vpop.xlane.xlu1 %2355 }
 0xe38   : > { %v2365_v54 = vmul.f32 1.442695, %v2359_v53  ;;  %v2360_v0 = vsub.f32 %v2344_v36, %v2356_v62 }
 0xe3a   : > { %5327 = vpow2.f32 %v2365_v54  ;;  %v2367_v3 = vmul.f32 1.442695, %v2360_v0  ;;  %v4474_v0 = vld [vmem:[%s6442_s7 + $0x38] sm:$0xff] }
 0xe40   : > { %v5326_v49 = vpop.eup %5325 }
 0xe41   : > { %v2372_v55 = vsel %vm813_vm5, %v5326_v49, 0.0 }
 0xe42   : > { %2373 = vadd.xlane.f32.xlu1 %v2372_v55 }
 0xe44   : > { %v5328_v57 = vpop.eup %5327 }
 0xe45   : > { %v2375_v51 = vsel %vm813_vm5, %v5328_v57, 0.0 }
 0xe46   : > { %2376 = vadd.xlane.f32.xlu0 %v2375_v51  ;;  %v4471_v51 = vld [vmem:[%s6442_s7 + $0x20] sm:$0xff] }
 0xe53   : > { %2039 = vrot.lane.b32.xlu1 %v6013_v19, %s6463_s17  ;;  %s6488_s17 = smov 112  }
 0xe5c   : > { %2036 = vrot.lane.b32.xlu0 %v6013_v19, %s6465_s21  ;;  %s6487_s21 = smov 120  }
 0xe5d   : > { %v2371_v61 = vpop.xlane.xlu0 %2370 }
 0xe5e   : > { %5329 = vrcp.f32 %v2371_v61  ;;  %v4472_v61 = vld [vmem:[%s6442_s7 + $0x28] sm:$0xff] }
 0xe5f   : > { %5331 = vpow2.f32 %v2367_v3  ;;  %v5177_v62 = vpack.c.bf16 %v4472_v61, %v4471_v51  ;;  %v4502_v51 = vld [vmem:[%s6440_s5 + $0x58] sm:$0xff] }
 0xe68   : > { %v5330_v4 = vpop.eup %5329 }
 0xe69   : > { %v2385_v5 = vmul.f32 %v5330_v4, %v5324_v44  ;;  %v5332_v6 = vpop.eup %5331  ;;  %v2704_v44 = vrot.slane %v5990_v2, %v5845_v25  ;;  %v4478_v4 = vld [vmem:[%s6443_s8 + $0x40] sm:$0xff] }
 0xe6a   : > { %v2378_v7 = vsel %vm813_vm5, %v5332_v6, 0.0 }
 0xe6b   : > { %4909 = vmatmul.mubr.msk.f32.vlgmr.msra.gmra.mrb[20].mxu1 %vm813_vm5, %v2385_v5  ;;  %v4479_v5 = vld [vmem:[%s6443_s8 + $0x48] sm:$0xff] }
 0xe6c   : > { %4918 = vmatprep.mubr.msk.f32.mxu1 %vm5462_vm0, %v5463_v8 }
 0xe77   : > { %2379 = vadd.xlane.f32.xlu1 %v2378_v7  ;;  %v5183_v7 = vpack.c.bf16 %v4479_v5, %v4478_v4  ;;  %v2992_v4 = vrot.slane %v5990_v2, %v5949_v42 }
 0xe88   : > { %2042 = vrot.lane.b32.xlu1 %v6013_v19, %s6483_s27 }
 0xecf   : > { %v2374_v9 = vpop.xlane.xlu1 %2373 }
 0xed0   : > { %5333 = vrcp.f32 %v2374_v9  ;;  %v4481_v9 = vld [vmem:[%s6443_s8 + $0x58] sm:$0xff] }
 0xed3   : > { %v2377_v10 = vpop.xlane.xlu0 %2376  ;;  %v2040_v11 = vpop.permute.xlu1 %2039 }
 0xed4   : > { %5335 = vrcp.f32 %v2377_v10  ;;  %4917 = vmatpush3.msra.mxu1 %v2040_v11  ;;  %v4482_v11 = vld [vmem:[%s6443_s8 + $0x60] sm:$0xff] }
 0xed5   : > { %5170 = vmatprep.subr.bf16.mxu1 %v5461_v1 }
 0xed7   : > { %v2037_v12 = vpop.permute.xlu0 %2036 }
 0xed8   : > { %4912 = vmatpush3.msra.mxu0 %v2037_v12  ;;  %v4483_v12 = vld [vmem:[%s6443_s8 + $0x68] sm:$0xff] }
 0xed9   : > { %4921 = vmatprep.subr.mxu0 %v5463_v8 }
 0xeda   : > { %v5334_v13 = vpop.eup %5333 }
 0xedb   : > { %v2386_v15 = vmul.f32 %v5334_v13, %v5326_v49  ;;  %v5189_v13 = vpack.c.bf16 %v4483_v12, %v4482_v11 }
 0xedd   : > { %4914 = vmatmul.mubr.msk.f32.vlgmr.msra.gmra.mrb[24].mxu0 %vm813_vm5, %v2386_v15 }
 0xede   : > { %v5336_v16 = vpop.eup %5335  ;;  %4923 = vmatprep.mubr.msk.f32.mxu0 %vm5462_vm0, %v5463_v8 }
 0xedf   : > { %v2387_v17 = vmul.f32 %v5336_v16, %v5328_v57 }
 0xee1   : > { %4919 = vmatmul.mubr.msk.f32.vlgmr.msra.gmra.mrb[22].mxu1 %vm813_vm5, %v2387_v17 }
 0xee2   : > { %4934 = vmatprep.mubr.msk.f32.mxu1 %vm5462_vm0, %v5463_v8  ;;  %5172 = vmatpush3.bf16.msra.mxu1 %v5171_v28  ;;  %v4476_v28 = vld [vmem:[%s6445_s10 + $0x1] ss:$0 sm:$0xff] }
 0xee3   : > { %5173 = vmatprep.subr.bf16.mxu1 %v5461_v1 }
 0xee6   : > { %5175 = vmatpush3.bf16.msra.mxu1 %v5174_v30 }
 0xee7   : > { %5182 = vmatprep.subr.bf16.mxu1 %v5461_v1 }
 0xf04   : > { %v2380_v18 = vpop.xlane.xlu1 %2379 }
 0xf05   : > { %5337 = vrcp.f32 %v2380_v18  ;;  %v2795_v18 = vrot.slane %v5990_v2, %v5888_v59 }
 0xf08   : > { %v2043_v19 = vpop.permute.xlu1 %2042 }
 0xf09   : > { %4922 = vmatpush3.msra.mxu0 %v2043_v19 }
 0xf0a   : > { %5176 = vmatprep.subr.bf16.mxu0 %v5461_v1 }
 0xf0f   : > { %v5338_v20 = vpop.eup %5337 }
 0xf10   : > { %v2388_v21 = vmul.f32 %v5338_v20, %v5332_v6  ;;  %v4480_v6 = vld [vmem:[%s6443_s8 + $0x50] sm:$0xff] }
 0xf11   : > { %v5186_v10 = vpack.c.bf16 %v4481_v9, %v4480_v6 }
 0xf12   : > { %4924 = vmatmul.mubr.msk.f32.vlgmr.msra.gmra.mrb[26].mxu0 %vm813_vm5, %v2388_v21  ;;  %v2800_v21 = vrot.slane %v5990_v2, %v5891_v60 }
 0xf13   : > { %4945 = vmatprep.mubr.msk.f32.mxu0 %vm5462_vm0, %v5463_v8  ;;  %5178 = vmatpush3.bf16.msra.mxu0 %v5177_v62 }
 0xf14   : > { %5179 = vmatprep.subr.bf16.mxu0 %v5461_v1 }
 0xf3e   : > { %v2458_v22 = vpop.f32.mrb[20].mxu1 }
 0xf3f   : > { %v4910_v23 = vpop.f32.mrb[21].mxu1 }
 0xfb0   : > { %v2531_v31 = vpop.f32.mrb[24].mxu0 }
 0xfb1   : > { %2682 = vrot.lane.b32.xlu0 %v2531_v31, %s6484_s15  ;;  %v4915_v32 = vpop.f32.mrb[25].mxu0 }
 0xfb4   : > { %v2604_v33 = vpop.f32.mrb[22].mxu1 }
 0xfb5   : > { %2686 = vrot.lane.b32.xlu1 %v2604_v33, %s6485_s14  ;;  %v4920_v34 = vpop.f32.mrb[23].mxu1  ;;  %v2901_v33 = vrot.slane %v5990_v2, %v5914_v14 }
 0xfe5   : > { %v2677_v35 = vpop.f32.mrb[26].mxu0 }
 0xfe6   : > { %2690 = vrot.lane.b32.xlu0 %v2677_v35, %s6486_s20  ;;  %v4925_v36 = vpop.f32.mrb[27].mxu0 }
0x1023   : > { %v2683_v37 = vpop.permute.xlu0 %2682 }
0x1024   : > { %v2693_v40 = vsel %vm813_vm5, %v2458_v22, %v2683_v37 }
0x1027   : > { %v2687_v39 = vpop.permute.xlu1 %2686 }
0x1028   : > { %v2694_v38 = vsel %vm1463_vm6, %v2693_v40, %v2687_v39 }
0x1058   : > { %v2691_v41 = vpop.permute.xlu0 %2690 }
0x1059   : > { %v2695_v43 = vsel %vm1465_vm7, %v2694_v38, %v2691_v41 }
0x105a   : > { %4935 = vmatmul.mubr.msk.f32.vlgmr.msra.gmra.mrb[24].mxu1 %vm559_vm4, %v2695_v43 }
0x105b   : > { %4964 = vmatprep.mubr.msk.f32.mxu1 %vm5462_vm0, %v5463_v8  ;;  %5184 = vmatpush3.bf16.msra.mxu1 %v5183_v7 }
0x105c   : > { %5185 = vmatprep.subr.bf16.mxu1 %v5461_v1 }
0x105f   : > { %5187 = vmatpush3.bf16.msra.mxu1 %v5186_v10 }
0x1060   : > { %5188 = vmatprep.subr.bf16.mxu1 %v5461_v1 }
0x1063   : > { %5190 = vmatpush3.bf16.msra.mxu1 %v5189_v13  ;;  %v4494_v13 = vld [vmem:[%s6439_s4 + $0x40] sm:$0xff] }
0x1064   : > { %5191 = vmatprep.subr.bf16.mxu1 %v5461_v1 }
0x1067   : > { %5193 = vmatpush3.bf16.msra.mxu1 %v5192_v27 }
0x1068   : > { %5206 = vmatprep.subr.bf16.mxu1 %v5461_v1 }
0x112d   : > { %v2774_v45 = vpop.f32.mrb[24].mxu1 }
0x112e   : > { %v2775_v46 = vadd.f32 %v2774_v45, %v2704_v44  ;;  %v4936_v47 = vpop.f32.mrb[25].mxu1  ;;  %v4489_v45 = vld [vmem:[%s6438_s3 + $0x40] sm:$0xff] }
0x1130   : > { %v2778_v48 = vadd.f32 %v2775_v46, %v5965_v58  ;;  %v4473_v58 = vld [vmem:[%s6442_s7 + $0x30] sm:$0xff]  ;;  %v4490_v46 = vld [vmem:[%s6438_s3 + $0x48] sm:$0xff] }
0x1131   : > { %v5180_v3 = vpack.c.bf16 %v4474_v0, %v4473_v58  ;;  %v5195_v47 = vpack.c.bf16 %v4490_v46, %v4489_v45 }
0x1132   : > { %v2779_v52 = vsel %vm559_vm4, %v2778_v48, 0.0 }
0x1133   : > { %2780 = vadd.xlane.f32.xlu1 %v2779_v52  ;;  %5181 = vmatpush3.bf16.msra.mxu0 %v5180_v3  ;;  %v4500_v52 = vld [vmem:[%s6440_s5 + $0x48] sm:$0xff]  ;;  %v4438_v3 = vld [vmem:[%s6444_s9 + $0x18] sm:$0x7] }
0x1134   : > { %5194 = vmatprep.subr.bf16.mxu0 %v5461_v1  ;;  %v2997_v7 = vrot.slane %v4438_v3, %v5743_v50  ;;  %v3002_v10 = vrot.slane %v4438_v3, %v5753_v56  ;;  %v3007_v12 = vrot.slane %v4438_v3, %v5769_v63 }
0x11c0   : > { %v2781_v53 = vpop.xlane.xlu1 %2780 }
0x11c1   : > { %v2782_v54 = vmul.f32 0.03125, %v2781_v53 }
0x11c3   : > { %v2783_v49 = vsub.f32 %v2778_v48, %v2782_v54  ;;  %v4499_v48 = vld [vmem:[%s6440_s5 + $0x40] sm:$0xff]  ;;  %v4491_v54 = vld [vmem:[%s6438_s3 + $0x50] sm:$0xff] }
0x11c4   : > { %v5207_v53 = vpack.c.bf16 %v4500_v52, %v4499_v48 }
0x11c5   : > { %v2784_v55 = vmul.f32 %v2783_v49, %v2783_v49 }
0x11c7   : > { %v2785_v57 = vsel %vm559_vm4, %v2784_v55, 0.0  ;;  %v4501_v55 = vld [vmem:[%s6440_s5 + $0x50] sm:$0xff] }
0x11c8   : > { %2786 = vadd.xlane.f32.xlu0 %v2785_v57  ;;  %v5210_v61 = vpack.c.bf16 %v4502_v51, %v4501_v55 }
0x1255   : > { %v2787_v15 = vpop.xlane.xlu0 %2786 }
0x1256   : > { %v2788_v16 = vmul.f32 0.03125, %v2787_v15  ;;  %v4495_v15 = vld [vmem:[%s6439_s4 + $0x48] sm:$0xff] }
0x1257   : > { %v5201_v2 = vpack.c.bf16 %v4495_v15, %v4494_v13 }
0x1258   : > { %v2789_v17 = vadd.f32 1e-05, %v2788_v16 }
0x125a   : > { %5339 = vrsqrt.f32 %v2789_v17 }
0x1264   : > { %v5340_v19 = vpop.eup %5339 }
0x1265   : > { %v2791_v20 = vmul.f32 %v5340_v19, %v2783_v49  ;;  %v4492_v49 = vld [vmem:[%s6438_s3 + $0x58] sm:$0xff] }
0x1266   : > { %v5198_v57 = vpack.c.bf16 %v4492_v49, %v4491_v54  ;;  %v4497_v19 = vld [vmem:[%s6439_s4 + $0x58] sm:$0xff] }
0x1267   : > { %v2796_v22 = vmul.f32 %v2795_v18, %v2791_v20  ;;  %v4496_v18 = vld [vmem:[%s6439_s4 + $0x50] sm:$0xff] }
0x1268   : > { %v5204_v20 = vpack.c.bf16 %v4497_v19, %v4496_v18 }
0x1269   : > { %v2801_v23 = vadd.f32 %v2800_v21, %v2796_v22  ;;  %v6211_v21 = vld [vmem:[%s6444_s9 + $0x20] sm:$0xff] }
0x126a   : > { %v3020_v22 = vrot.slane %v6211_v21, %v5743_v50 }
0x126b   : > { %4946 = vmatmul.mubr.msk.f32.vlgmr.msra.gmra.mrb[28].mxu0 %vm559_vm4, %v2801_v23 }
0x126c   : > { %4975 = vmatprep.mubr.msk.f32.mxu0 %vm5462_vm0, %v5463_v8  ;;  %5196 = vmatpush3.bf16.msra.mxu0 %v5195_v47 }
0x126d   : > { %5197 = vmatprep.subr.bf16.mxu0 %v5461_v1 }
0x1270   : > { %5199 = vmatpush3.bf16.msra.mxu0 %v5198_v57 }
0x1271   : > { %5200 = vmatprep.subr.bf16.mxu0 %v5461_v1 }
0x133e   : > { %v2884_v29 = vpop.f32.mrb[28].mxu0 }
0x133f   : > { %v2885_v30 = vadd.f32 %v4476_v28, %v2884_v29  ;;  %v4947_v31 = vpop.f32.mrb[29].mxu0  ;;  %v3102_v29 = vrot.slane %v6211_v21, %v5753_v56 }
0x1341   : > { %v2888_v32 = vmax.f32 %v2885_v30, 0.0 }
0x1343   : > { %4965 = vmatmul.mubr.msk.f32.vlgmr.msra.gmra.mrb[26].mxu1 %vm1670_vm8, %v2888_v32 }
0x1344   : > { %4997 = vmatprep.mubr.msk.f32.mxu1 %vm5462_vm0, %v5463_v8  ;;  %5208 = vmatpush3.bf16.msra.mxu1 %v5207_v53 }
0x1345   : > { %5209 = vmatprep.subr.bf16.mxu1 %v5461_v1 }
0x1348   : > { %5211 = vmatpush3.bf16.msra.mxu1 %v5210_v61 }
0x1349   : > { %5010 = vmatprep.subr.mxu1 %v5463_v8 }
0x1416   : > { %v2971_v34 = vpop.f32.mrb[26].mxu1 }
0x1417   : > { %v2972_v35 = vadd.f32 %v2971_v34, %v2901_v33  ;;  %v4966_v36 = vpop.f32.mrb[27].mxu1  ;;  %v3181_v34 = vrot.slane %v6211_v21, %v5769_v63 }
0x1419   : > { %v2975_v37 = vadd.f32 %v2972_v35, %v2801_v23 }
0x141b   : > { %v2976_v39 = vsel %vm559_vm4, %v2975_v37, 0.0 }
0x141c   : > { %2977 = vadd.xlane.f32.xlu0 %v2976_v39 }
0x14a9   : > { %v2978_v40 = vpop.xlane.xlu0 %2977 }
0x14aa   : > { %v2979_v38 = vmul.f32 0.03125, %v2978_v40 }
0x14ac   : > { %v2980_v41 = vsub.f32 %v2975_v37, %v2979_v38 }
0x14ae   : > { %v2981_v43 = vmul.f32 %v2980_v41, %v2980_v41 }
0x14b0   : > { %v2982_v44 = vsel %vm559_vm4, %v2981_v43, 0.0 }
0x14b1   : > { %2983 = vadd.xlane.f32.xlu1 %v2982_v44 }
0x153e   : > { %v2984_v62 = vpop.xlane.xlu1 %2983 }
0x153f   : > { %v2985_v58 = vmul.f32 0.03125, %v2984_v62 }
0x1541   : > { %v2986_v0 = vadd.f32 1e-05, %v2985_v58 }
0x1543   : > { %5341 = vrsqrt.f32 %v2986_v0 }
0x154d   : > { %v5342_v5 = vpop.eup %5341 }
0x154e   : > { %v2988_v6 = vmul.f32 %v5342_v5, %v2980_v41 }
0x1550   : > { %v2993_v9 = vmul.f32 %v2992_v4, %v2988_v6 }
0x1552   : > { %v2998_v11 = vadd.f32 %v2997_v7, %v2993_v9 }
0x1554   : > { %v3003_v16 = vmul.f32 %v3002_v10, %v2998_v11 }
0x1556   : > { %v6186_v17 = vadd.f32 %v3007_v12, %v3003_v16 }
0x1558   : > { %4976 = vmatmul.mubr.msk.f32.vlgmr.msra.gmra.mrb[30].mxu0 %vm559_vm4, %v6186_v17  ;;  %4998 = vmatmul.mubr.msk.f32.vlgmr.msra.gmra.mrb[28].mxu1 %vm559_vm4, %v6186_v17 }
0x1559   : > { %5202 = vmatpush3.bf16.msra.mxu0 %v5201_v2  ;;  %4986 = vmatprep.mubr.msk.f32.mxu0 %vm5462_vm0, %v5463_v8 }
0x155a   : > { %5203 = vmatprep.subr.bf16.mxu0 %v5461_v1  ;;  %5012 = vmatprep.mubr.msk.f32.mxu1 %vm5462_vm0, %v5463_v8 }
0x155d   : > { %5205 = vmatpush3.bf16.msra.mxu0 %v5204_v20 }
0x155e   : > { %5000 = vmatprep.subr.mxu0 %v5463_v8 }
0x1560   : > { %4987 = vmatmul.mubr.msk.f32.vlgmr.msra.gmra.mrb[32].mxu0 %vm559_vm4, %v6186_v17 }
0x1561   : > { %5002 = vmatprep.mubr.msk.f32.mxu0 %vm5462_vm0, %v5463_v8 }
0x162b   : > { %v3090_v23 = vpop.f32.mrb[30].mxu0  ;;  %v3248_v24 = vpop.f32.mrb[28].mxu1 }
0x162c   : > { %v3091_v26 = vadd.f32 %v3090_v23, %v3020_v22  ;;  %v4977_v27 = vpop.f32.mrb[31].mxu0  ;;  %v4999_v28 = vpop.f32.mrb[29].mxu1  ;;  %v6234_v37 = vadd.f32 %v3248_v24, %v3181_v34 }
0x162e   : > { %3253 = vrot.lane.b32.xlu1 %v3091_v26, %s6487_s21 }
0x1633   : > { %v3169_v30 = vpop.f32.mrb[32].mxu0 }
0x1634   : > { %v3170_v31 = vadd.f32 %v3169_v30, %v3102_v29  ;;  %v4988_v32 = vpop.f32.mrb[33].mxu0 }
0x1636   : > { %3262 = vrot.lane.b32.xlu1 %v3170_v31, %s6488_s17  ;;  %3260 = vrot.lane.b32.xlu0 %v3170_v31, %s6487_s21 }
0x1637   : > { %5001 = vmatpush3.xpose.msk.msra.mxu0 %vm813_vm5, %v3170_v31 }
0x1638   : > { %5005 = vmatprep.subr.mxu0 %v5463_v8 }
0x163a   : > { %5003 = vmatmul.mubr.msk.f32.vlgmr.msra.gmra.mrb[34].mxu0 %vm813_vm5, %v3091_v26  ;;  %3255 = vrot.lane.b32.xlu1 %v3091_v26, %s6488_s17 }
0x163b   : > { %3264 = vrot.lane.b32.xlu0 %v3170_v31, %s6483_s27  ;;  %5007 = vmatprep.mubr.msk.f32.mxu0 %vm5462_vm0, %v5463_v8 }
0x163f   : > { %3257 = vrot.lane.b32.xlu0 %v3091_v26, %s6483_s27 }
0x16a0   : > { %v3254_v33 = vpop.permute.xlu1 %3253 }
0x16a8   : > { %v3263_v35 = vpop.permute.xlu1 %3262  ;;  %v3261_v36 = vpop.permute.xlu0 %3260 }
0x16a9   : > { %5006 = vmatpush3.xpose.msk.msra.mxu0 %vm813_vm5, %v3261_v36  ;;  %5011 = vmatpush3.xpose.msk.msra.mxu1 %vm813_vm5, %v3263_v35 }
0x16aa   : > { %5020 = vmatprep.subr.mxu1 %v5463_v8  ;;  %5015 = vmatprep.subr.mxu0 %v5463_v8 }
0x16ac   : > { %v3256_v39 = vpop.permute.xlu1 %3255  ;;  %5008 = vmatmul.mubr.msk.f32.vlgmr.msra.gmra.mrb[36].mxu0 %vm813_vm5, %v3254_v33 }
0x16ad   : > { %v3265_v40 = vpop.permute.xlu0 %3264  ;;  %5013 = vmatmul.mubr.msk.f32.vlgmr.msra.gmra.mrb[30].mxu1 %vm813_vm5, %v3256_v39  ;;  %5017 = vmatprep.mubr.msk.f32.mxu0 %vm5462_vm0, %v5463_v8 }
0x16ae   : > { %5016 = vmatpush3.xpose.msk.msra.mxu0 %vm813_vm5, %v3265_v40  ;;  %5021 = vmatpush3.msra.mxu1 %v6234_v37 }
0x16af   : > { %5022 = vmatprep.mubr.msk.f32.mxu1 %vm5462_vm0, %v5463_v8  ;;  %5030 = vmatprep.subr.mxu1 %v5463_v8 }
0x16b0   : > { %5025 = vmatprep.subr.mxu0 %v5463_v8 }
0x16b1   : > { %v3258_v38 = vpop.permute.xlu0 %3257 }
0x16b2   : > { %5018 = vmatmul.mubr.msk.f32.vlgmr.msra.gmra.mrb[38].mxu0 %vm813_vm5, %v3258_v38 }
0x16b3   : > { %5027 = vmatprep.mubr.msk.f32.mxu0 %vm5462_vm0, %v5463_v8 }
0x170d   : > { %v3346_v41 = vpop.f32.mrb[34].mxu0 }
0x170e   : > { %v3572_v43 = vmul.f32 0.35355338, %v3346_v41  ;;  %v5004_v44 = vpop.f32.mrb[35].mxu0 }
0x170f   : > { %v4517_v44 = vld [vmem:[%s6441_s6 + $0x48] sm:$0xff] }
0x1710   : > { %v3576_v45 = vsel %vm813_vm5, %v3572_v43, -inf }
0x1711   : > { %3577 = vmax.xlane.f32.xlu1 %v3576_v45  ;;  %v4518_v45 = vld [vmem:[%s6441_s6 + $0x50] sm:$0xff] }
0x177f   : > { %v3420_v46 = vpop.f32.mrb[36].mxu0 }
0x1780   : > { %v3573_v47 = vmul.f32 0.35355338, %v3420_v46  ;;  %v5009_v48 = vpop.f32.mrb[37].mxu0  ;;  %v3494_v52 = vpop.f32.mrb[30].mxu1 }
0x1781   : > { %v5014_v53 = vpop.f32.mrb[31].mxu1  ;;  %v3574_v54 = vmul.f32 0.35355338, %v3494_v52 }
0x1782   : > { %v3579_v49 = vsel %vm813_vm5, %v3573_v47, -inf }
0x1783   : > { %3580 = vmax.xlane.f32.xlu0 %v3579_v49  ;;  %v3582_v61 = vsel %vm813_vm5, %v3574_v54, -inf }
0x1785   : > { %v3568_v55 = vpop.f32.mrb[38].mxu0 }
0x1786   : > { %v3575_v57 = vmul.f32 0.35355338, %v3568_v55  ;;  %v5019_v51 = vpop.f32.mrb[39].mxu0 }
0x1787   : > { %3583 = vmax.xlane.f32.xlu0 %v3582_v61 }
0x1788   : > { %v3585_v62 = vsel %vm813_vm5, %v3575_v57, -inf }
0x1789   : > { %3586 = vmax.xlane.f32.xlu1 %v3585_v62 }
0x179e   : > { %v3578_v58 = vpop.xlane.xlu1 %3577 }
0x179f   : > { %v3588_v0 = vsub.f32 %v3572_v43, %v3578_v58  ;;  %v4516_v43 = vld [vmem:[%s6441_s6 + $0x40] sm:$0xff] }
0x17a0   : > { %v5213_v46 = vpack.c.bf16 %v4517_v44, %v4516_v43 }
0x17a1   : > { %v3592_v3 = vmul.f32 1.442695, %v3588_v0 }
0x17a3   : > { %5343 = vpow2.f32 %v3592_v3 }
0x17ad   : > { %v5344_v4 = vpop.eup %5343 }
0x17ae   : > { %v3600_v5 = vsel %vm813_vm5, %v5344_v4, 0.0 }
0x17af   : > { %3601 = vadd.xlane.f32.xlu0 %v3600_v5 }
0x1810   : > { %v3581_v6 = vpop.xlane.xlu0 %3580 }
0x1811   : > { %v3589_v7 = vsub.f32 %v3573_v47, %v3581_v6  ;;  %v4519_v47 = vld [vmem:[%s6441_s6 + $0x58] sm:$0xff] }
0x1812   : > { %v5216_v48 = vpack.c.bf16 %v4519_v47, %v4518_v45 }
0x1813   : > { %v3594_v9 = vmul.f32 1.442695, %v3589_v7 }
0x1814   : > { %v3584_v10 = vpop.xlane.xlu0 %3583 }
0x1815   : > { %5345 = vpow2.f32 %v3594_v9  ;;  %v3590_v11 = vsub.f32 %v3574_v54, %v3584_v10 }
0x1816   : > { %v3587_v19 = vpop.xlane.xlu1 %3586 }
0x1817   : > { %v3596_v12 = vmul.f32 1.442695, %v3590_v11  ;;  %v3591_v20 = vsub.f32 %v3575_v57, %v3587_v19  ;;  %v4524_v19 = vld [vmem:[%s6442_s7 + $0x58] sm:$0xff] }
0x1819   : > { %5347 = vpow2.f32 %v3596_v12  ;;  %v3598_v22 = vmul.f32 1.442695, %v3591_v20 }
0x181f   : > { %v5346_v13 = vpop.eup %5345 }
0x1820   : > { %v3603_v15 = vsel %vm813_vm5, %v5346_v13, 0.0 }
0x1821   : > { %3604 = vadd.xlane.f32.xlu1 %v3603_v15 }
0x1823   : > { %v5348_v16 = vpop.eup %5347 }
0x1824   : > { %v3606_v2 = vsel %vm813_vm5, %v5348_v16, 0.0 }
0x1825   : > { %3607 = vadd.xlane.f32.xlu0 %v3606_v2  ;;  %v4521_v2 = vld [vmem:[%s6442_s7 + $0x40] sm:$0xff] }
0x1832   : > { %3270 = vrot.lane.b32.xlu1 %v6234_v37, %s6488_s17  ;;  %s5395_s17 = sshll.u32 %s5470_s29, 4  ;;  %s5396_s17 = int_to_ptr.vmem [resolvable:$false] %s5395_s17 }
0x1833   : > { %p5398_p2 = scmp.lt.s32.totalorder %s6395_s1, %s5396_s17 }
0x183b   : > { %3267 = vrot.lane.b32.xlu0 %v6234_v37, %s6487_s21  ;;  %s5391_s21 = scalar_lea.vmem %s6395_s1, 16 }
0x183c   : > { %v3602_v18 = vpop.xlane.xlu0 %3601  ;;  %p5392_p5 = scmp.ne.s32.totalorder %s6395_s1, %s5391_s21 }
0x183d   : > { %5349 = vrcp.f32 %v3602_v18 }
0x183e   : > { %5351 = vpow2.f32 %v3598_v22  ;;  %v4528_v22 = vld [vmem:[%s6443_s8 + $0x80] sm:$0xff]  ;;  %p5393_p10 = pnand %p5392_p5, %p6489_p9 }
0x1840   : > { %p5394_p12 = pneg %p5393_p10 }
0x1847   : > { %v5350_v23 = vpop.eup %5349 }
0x1848   : > { %v3616_v24 = vmul.f32 %v5350_v23, %v5344_v4  ;;  %v5352_v26 = vpop.eup %5351  ;;  %v3935_v4 = vrot.slane %v6211_v21, %v5845_v25  ;;  %v4522_v25 = vld [vmem:[%s6442_s7 + $0x48] sm:$0xff] }
0x1849   : > { %v3609_v27 = vsel %vm813_vm5, %v5352_v26, 0.0  ;;  %v5219_v18 = vpack.c.bf16 %v4522_v25, %v4521_v2  ;;  %v4529_v23 = vld [vmem:[%s6443_s8 + $0x88] sm:$0xff] }
0x184a   : > { %5023 = vmatmul.mubr.msk.f32.vlgmr.msra.gmra.mrb[32].mxu1 %vm813_vm5, %v3616_v24  ;;  %v4530_v24 = vld [vmem:[%s6443_s8 + $0x90] sm:$0xff] }
0x184b   : > { %5032 = vmatprep.mubr.msk.f32.mxu1 %vm5462_vm0, %v5463_v8 }
0x1856   : > { %3610 = vadd.xlane.f32.xlu1 %v3609_v27  ;;  %v4531_v27 = vld [vmem:[%s6443_s8 + $0x98] sm:$0xff] }
0x1867   : > { %3273 = vrot.lane.b32.xlu1 %v6234_v37, %s6483_s27  ;;  %s5397_s27 = scalar_lea.vmem %s5396_s17, 32 }
0x1868   : > { %p5399_p3 = scmp.lt.s32.totalorder %s5397_s27, %s5391_s21 }
0x186a   : > { %p5400_p4 = por %p5399_p3, %p5398_p2 }
0x186c   : > { %p5401_p7 = pnand %p5400_p4, %p5394_p12 }
0x18ae   : > { %v3605_v28 = vpop.xlane.xlu1 %3604 }
0x18af   : > { %5353 = vrcp.f32 %v3605_v28  ;;  %v5228_v28 = vpack.c.bf16 %v4531_v27, %v4530_v24 }
0x18b2   : > { %v3608_v29 = vpop.xlane.xlu0 %3607  ;;  %v3271_v30 = vpop.permute.xlu1 %3270 }
0x18b3   : > { %5355 = vrcp.f32 %v3608_v29  ;;  %5031 = vmatpush3.msra.mxu1 %v3271_v30  ;;  %v4532_v29 = vld [vmem:[%s6443_s8 + $0xa0] sm:$0xff]  ;;  %v4533_v30 = vld [vmem:[%s6443_s8 + $0xa8] sm:$0xff] }
0x18b4   : > { %5212 = vmatprep.subr.bf16.mxu1 %v5461_v1 }
0x18b6   : > { %v3268_v31 = vpop.permute.xlu0 %3267 }
0x18b7   : > { %5026 = vmatpush3.msra.mxu0 %v3268_v31  ;;  %v5231_v31 = vpack.c.bf16 %v4533_v30, %v4532_v29 }
0x18b8   : > { %5035 = vmatprep.subr.mxu0 %v5463_v8 }
0x18b9   : > { %v5354_v32 = vpop.eup %5353 }
0x18ba   : > { %v3617_v33 = vmul.f32 %v5354_v32, %v5346_v13 }
0x18bc   : > { %5028 = vmatmul.mubr.msk.f32.vlgmr.msra.gmra.mrb[40].mxu0 %vm813_vm5, %v3617_v33 }
0x18bd   : > { %v5356_v34 = vpop.eup %5355  ;;  %5037 = vmatprep.mubr.msk.f32.mxu0 %vm5462_vm0, %v5463_v8 }
0x18be   : > { %v3618_v35 = vmul.f32 %v5356_v34, %v5348_v16 }
0x18c0   : > { %5033 = vmatmul.mubr.msk.f32.vlgmr.msra.gmra.mrb[34].mxu1 %vm813_vm5, %v3618_v35  ;;  %v4026_v35 = vrot.slane %v6211_v21, %v5888_v59  ;;  %v4535_v59 = vld [vmem:[%s6443_s8 + $0xb8] sm:$0xff] }
0x18c1   : > { %5048 = vmatprep.mubr.msk.f32.mxu1 %vm5462_vm0, %v5463_v8  ;;  %5214 = vmatpush3.bf16.msra.mxu1 %v5213_v46 }
0x18c2   : > { %5215 = vmatprep.subr.bf16.mxu1 %v5461_v1 }
0x18c5   : > { %5217 = vmatpush3.bf16.msra.mxu1 %v5216_v48 }
0x18c6   : > { %5224 = vmatprep.subr.bf16.mxu1 %v5461_v1 }
0x18e3   : > { %v3611_v36 = vpop.xlane.xlu1 %3610 }
0x18e4   : > { %5357 = vrcp.f32 %v3611_v36 }
0x18e7   : > { %v3274_v37 = vpop.permute.xlu1 %3273 }
0x18e8   : > { %5036 = vmatpush3.msra.mxu0 %v3274_v37 }
0x18e9   : > { %5218 = vmatprep.subr.bf16.mxu0 %v5461_v1 }
0x18ee   : > { %v5358_v39 = vpop.eup %5357 }
0x18ef   : > { %v3619_v40 = vmul.f32 %v5358_v39, %v5352_v26  ;;  %v5225_v26 = vpack.c.bf16 %v4529_v23, %v4528_v22  ;;  %v4031_v39 = vrot.slane %v6211_v21, %v5891_v60  ;;  %v4526_v60 = vld [vmem:[%s6445_s10 + $0x2] ss:$0 sm:$0xff] }
0x18f1   : > { %5038 = vmatmul.mubr.msk.f32.vlgmr.msra.gmra.mrb[42].mxu0 %vm813_vm5, %v3619_v40 }
0x18f2   : > { %5059 = vmatprep.mubr.msk.f32.mxu0 %vm5462_vm0, %v5463_v8  ;;  %5220 = vmatpush3.bf16.msra.mxu0 %v5219_v18 }
0x18f3   : > { %5221 = vmatprep.subr.bf16.mxu0 %v5461_v1 }
0x191d   : > { %v3689_v38 = vpop.f32.mrb[32].mxu1 }
0x191e   : > { %v5024_v41 = vpop.f32.mrb[33].mxu1 }
0x191f   : > { %v4534_v41 = vld [vmem:[%s6443_s8 + $0xb0] sm:$0xff] }
0x1920   : > { %v5234_v43 = vpack.c.bf16 %v4535_v59, %v4534_v41 }
0x198f   : > { %v3762_v52 = vpop.f32.mrb[40].mxu0 }
0x1990   : > { %3913 = vrot.lane.b32.xlu0 %v3762_v52, %s6484_s15  ;;  %v5029_v53 = vpop.f32.mrb[41].mxu0 }
0x1993   : > { %v3835_v54 = vpop.f32.mrb[34].mxu1 }
0x1994   : > { %3917 = vrot.lane.b32.xlu1 %v3835_v54, %s6485_s14  ;;  %v5034_v49 = vpop.f32.mrb[35].mxu1 }
0x19c4   : > { %v3908_v55 = vpop.f32.mrb[42].mxu0 }
0x19c5   : > { %3921 = vrot.lane.b32.xlu0 %v3908_v55, %s6486_s20  ;;  %v5039_v57 = vpop.f32.mrb[43].mxu0  ;;  %s6393_s20 = scalar_lea.hbm %s6448_s13, %s4538_s2 }
0x1a02   : > { %v3914_v51 = vpop.permute.xlu0 %3913 }
0x1a03   : > { %v3924_v62 = vsel %vm813_vm5, %v3689_v38, %v3914_v51 }
0x1a06   : > { %v3918_v61 = vpop.permute.xlu1 %3917 }
0x1a07   : > { %v3925_v58 = vsel %vm1463_vm6, %v3924_v62, %v3918_v61 }
0x1a37   : > { %v3922_v0 = vpop.permute.xlu0 %3921 }
0x1a38   : > { %v3926_v3 = vsel %vm1465_vm7, %v3925_v58, %v3922_v0  ;;  %v4248_v58 = vld [vmem:[%s6446_s11] sm:$0xff]  ;;  %v4250_v0 = vld [vmem:[%s6446_s11 + $0x10] sm:$0xff] }
0x1a39   : > { %5049 = vmatmul.mubr.msk.f32.vlgmr.msra.gmra.mrb[36].mxu1 %vm559_vm4, %v3926_v3 }
0x1a3a   : > { %5078 = vmatprep.mubr.msk.f32.mxu1 %vm5462_vm0, %v5463_v8  ;;  %5226 = vmatpush3.bf16.msra.mxu1 %v5225_v26 }
0x1a3b   : > { %5227 = vmatprep.subr.bf16.mxu1 %v5461_v1 }
0x1a3e   : > { %5229 = vmatpush3.bf16.msra.mxu1 %v5228_v28 }
0x1a3f   : > { %5230 = vmatprep.subr.bf16.mxu1 %v5461_v1 }
0x1a42   : > { %5232 = vmatpush3.bf16.msra.mxu1 %v5231_v31 }
0x1a43   : > { %5233 = vmatprep.subr.bf16.mxu1 %v5461_v1 }
0x1a46   : > { %5235 = vmatpush3.bf16.msra.mxu1 %v5234_v43 }
0x1b0c   : > { %v4005_v5 = vpop.f32.mrb[36].mxu1 }
0x1b0d   : > { %v4006_v6 = vadd.f32 %v4005_v5, %v3935_v4  ;;  %v5050_v7 = vpop.f32.mrb[37].mxu1  ;;  %v4251_v4 = vld [vmem:[%s6446_s11 + $0x18] sm:$0xff] }
0x1b0e   : > { %v5240_v5 = vpack.c.bf16 %v4251_v4, %v4250_v0 }
0x1b0f   : > { %v4009_v9 = vadd.f32 %v4006_v6, %v6186_v17  ;;  %v4523_v17 = vld [vmem:[%s6442_s7 + $0x50] sm:$0xff] }
0x1b10   : > { %v5222_v20 = vpack.c.bf16 %v4524_v19, %v4523_v17 }
0x1b11   : > { %v4010_v10 = vsel %vm559_vm4, %v4009_v9, 0.0 }
0x1b12   : > { %4011 = vadd.xlane.f32.xlu1 %v4010_v10  ;;  %5223 = vmatpush3.bf16.msra.mxu0 %v5222_v20  ;;  %v4488_v10 = vld [vmem:[%s6444_s9 + $0x28] sm:$0x7] }
0x1b13   : > { %5236 = vmatprep.subr.bf16.mxu0 %v5461_v1  ;;  %v4238_v25 = vrot.slane %v4488_v10, %v5769_v63 }
0x1b9f   : > { %v4012_v11 = vpop.xlane.xlu1 %4011 }
0x1ba0   : > { %v4013_v12 = vmul.f32 0.03125, %v4012_v11  ;;  %v4223_v11 = vrot.slane %v6211_v21, %v5949_v42 }
0x1ba2   : > { %v4014_v13 = vsub.f32 %v4009_v9, %v4013_v12 }
0x1ba4   : > { %v4015_v15 = vmul.f32 %v4014_v13, %v4014_v13 }
0x1ba6   : > { %v4016_v16 = vsel %vm559_vm4, %v4015_v15, 0.0 }
0x1ba7   : > { %4017 = vadd.xlane.f32.xlu0 %v4016_v16  ;;  %v4233_v16 = vrot.slane %v4488_v10, %v5753_v56  ;;  %v4252_v56 = vld [vmem:[%s6447_s12] sm:$0x1] }
0x1c34   : > { %v4018_v32 = vpop.xlane.xlu0 %4017 }
0x1c35   : > { %v4019_v33 = vmul.f32 0.03125, %v4018_v32 }
0x1c37   : > { %v4020_v34 = vadd.f32 1e-05, %v4019_v33 }
0x1c39   : > { %5359 = vrsqrt.f32 %v4020_v34 }
0x1c43   : > { %v5360_v36 = vpop.eup %5359 }
0x1c44   : > { %v4022_v37 = vmul.f32 %v5360_v36, %v4014_v13  ;;  %v4228_v13 = vrot.slane %v4488_v10, %v5743_v50 }
0x1c46   : > { %v4027_v40 = vmul.f32 %v4026_v35, %v4022_v37 }
0x1c48   : > { %v4032_v38 = vadd.f32 %v4031_v39, %v4027_v40 }
0x1c4a   : > { %5060 = vmatmul.mubr.msk.f32.vlgmr.msra.gmra.mrb[44].mxu0 %vm559_vm4, %v4032_v38 }
0x1c4b   : > { %5089 = vmatprep.mubr.msk.f32.mxu0 %vm5462_vm0, %v5463_v8  ;;  %v4132_v8 = vrot.slane %v6211_v21, %v5914_v14  ;;  %v4249_v14 = vld [vmem:[%s6446_s11 + $0x8] sm:$0xff] }
0x1c4c   : > { %v5237_v3 = vpack.c.bf16 %v4249_v14, %v4248_v58 }
0x1c4e   : > { %5238 = vmatpush3.bf16.msra.mxu0 %v5237_v3 }
0x1c4f   : > { %5239 = vmatprep.subr.bf16.mxu0 %v5461_v1 }
0x1c52   : > { %5241 = vmatpush3.bf16.msra.mxu0 %v5240_v5 }
0x1d1d   : > { %v4115_v44 = vpop.f32.mrb[44].mxu0 }
0x1d1e   : > { %v4116_v45 = vadd.f32 %v4526_v60, %v4115_v44  ;;  %v5061_v46 = vpop.f32.mrb[45].mxu0 }
0x1d20   : > { %v4119_v47 = vmax.f32 %v4116_v45, 0.0 }
0x1d22   : > { %5079 = vmatmul.mubr.msk.f32.vlgmr.msra.gmra.mrb[38].mxu1 %vm1670_vm8, %v4119_v47 }
0x1df5   : > { %v4202_v48 = vpop.f32.mrb[38].mxu1 }
0x1df6   : > { %v4203_v52 = vadd.f32 %v4202_v48, %v4132_v8  ;;  %v5080_v53 = vpop.f32.mrb[39].mxu1 }
0x1df8   : > { %v4206_v54 = vadd.f32 %v4203_v52, %v4032_v38 }
0x1dfa   : > { %v4207_v49 = vsel %vm559_vm4, %v4206_v54, 0.0 }
0x1dfb   : > { %4208 = vadd.xlane.f32.xlu0 %v4207_v49 }
0x1e88   : > { %v4209_v55 = vpop.xlane.xlu0 %4208 }
0x1e89   : > { %v4210_v57 = vmul.f32 0.03125, %v4209_v55 }
0x1e8b   : > { %v4211_v51 = vsub.f32 %v4206_v54, %v4210_v57 }
0x1e8d   : > { %v4212_v61 = vmul.f32 %v4211_v51, %v4211_v51 }
0x1e8f   : > { %v4213_v62 = vsel %vm559_vm4, %v4212_v61, 0.0 }
0x1e90   : > { %4214 = vadd.xlane.f32.xlu1 %v4213_v62 }
0x1f1d   : > { %v4215_v6 = vpop.xlane.xlu1 %4214 }
0x1f1e   : > { %v4216_v7 = vmul.f32 0.03125, %v4215_v6 }
0x1f20   : > { %v4217_v9 = vadd.f32 1e-05, %v4216_v7 }
0x1f22   : > { %5361 = vrsqrt.f32 %v4217_v9 }
0x1f2c   : > { %v5362_v12 = vpop.eup %5361 }
0x1f2d   : > { %v4219_v15 = vmul.f32 %v5362_v12, %v4211_v51 }
0x1f2f   : > { %v4224_v1 = vmul.f32 %v4223_v11, %v4219_v15 }
0x1f31   : > { %v4229_v2 = vadd.f32 %v4228_v13, %v4224_v1 }
0x1f33   : > { %v4234_v18 = vmul.f32 %v4233_v16, %v4229_v2 }
0x1f35   : > { %v4239_v17 = vadd.f32 %v4238_v25, %v4234_v18 }
0x1f37   : > { %v4240_v19 = vsel %vm559_vm4, %v4239_v17, 0.0 }
0x1f38   : > { %v4241_v20 = vrot.slane %v4240_v19, 4 }
0x1f3a   : > { %v4242_v22 = vadd.f32 %v4241_v20, %v4240_v19 }
0x1f3c   : > { %v4243_v23 = vrot.slane %v4242_v22, 2 }
0x1f3e   : > { %v4244_v42 = vadd.f32 %v4243_v23, %v4242_v22 }
0x1f40   : > { %v4245_v21 = vrot.slane %v4244_v42, 1 }
0x1f42   : > { %v4246_v24 = vadd.f32 %v4245_v21, %v4244_v42 }
0x1f44   : > { %v4247_v50 = vmul.f32 0.125, %v4246_v24 }
0x1f46   : > { %5090 = vmatmul.mubr.msk.f32.vlgmr.msra.gmra.mrb[46].mxu0 %vm559_vm4, %v4247_v50 }
0x2019   : > { %v4322_v63 = vpop.f32.mrb[46].mxu0 }
0x201a   : > { %v4323_v26 = vadd.f32 %v4322_v63, %v4252_v56  ;;  %v5091_v27 = vpop.f32.mrb[47].mxu0 }
0x201c   : > { %4327 = vst.msk [vmem:[%s443_s30] sm:$0x1] %vm4326_vm9, %v4323_v26 }
0x201d   : > { %5404 = shalt.err (!%p5401_p7)
}
0x201e   : > { %s5405_s22 = scalar_lea.hbm %s6393_s20, 16  ;;  %s5409_s0 = scalar_lea.hbm %s6448_s13, 32 }
0x201f   : > { %p5406_p8 = scmp.ne.s32.totalorder %s6393_s20, %s5405_s22  ;;  %p5410_p1 = scmp.lt.u32.totalorder %s6393_s20, %s6448_s13 }
0x2020   : > { %p5411_p0 = scmp.lt.u32.totalorder %s5409_s0, %s5405_s22  ;;  %p5413_p5 = scmp.lt.u32.totalorder %s5405_s22, %s6393_s20 }
0x2021   : > { %p5407_p11 = pnand %p5406_p8, %p6489_p9 }
0x2022   : > { %p5412_p6 = por %p5411_p0, %p5410_p1 }
0x2023   : > { %p5408_p13 = pneg %p5407_p11 }
0x2024   : > { %p5414_p10 = por %p5413_p5, %p5412_p6 }
0x2026   : > { %p5415_p12 = pnand %p5414_p10, %p5408_p13 }
0x2028   : > { %5418 = shalt.err (!%p5415_p12)
}
0x2029   : > { %5246 = dma.vmem_to_hbm [thread:$0]  (%p6489_p9), %s6395_s1, 16, %s6393_s20, %s4329_s24  }
0x202a PF: > { %p5258_p2 = scmp.ge.s32.totalorder %s5457_s28, 2  ;;  %s4353_s15 = sand.u32 1, %s5445_s25  }
0x202b   : > { %p6490_p3 = scmp.ne.s32.totalorder %s6474_s19, 0  ;;  %s4354_s14 = scalar_lea.sflag [#allocation4], %s4353_s15 }
0x202d   : > { %p5253_p4 = pnand %p5258_p2, %p6490_p3 }
0x202f   : > { %5440 = dma.done.wait (!%p5253_p4), %s4354_s14, 16  }
0x2030   : > { %5442 = vsyncadd (!%p5253_p4), %s4354_s14, 4294967280  ;;  %s6491_s28 = sld [smem:[#allocation9_spill]]  ;;  %s6492_s21 = sld [smem:[#allocation8_spill]] }
0x2031   : > { %s6493_s27 = sld [smem:[#allocation10_spill]]  ;;  %s6494_s25 = smov %s5449_s26 }
0x2036   : > { %p24_p7 = scmp.ge.s32.totalorder %s6491_s28, 4   ;;  %s6495_s26 = smov %s6492_s21 }
0x2038   :  { %26 = sbr.rel (!%p24_p7) target bundleno = 8 (0x8), region = 128 }
0x203f   :  { %4358 = vsyncpa [#allocation3], 1 }
0x2040   :  { %4360 = vsyncpa [#allocation3 + $0x1], 1 }
0x2041   :  { %4361 = vsyncpa [#allocation4], 1 }
0x2042   :  { %4363 = vsyncpa [#allocation4 + $0x1], 1 }

</bundles_post_ra>
